<compile_context>
chip_gen: v7x
topology: tpu7x:2x2x1
jax: 0.10.0
libtpu: 0.0.40
codegen_flags: <defaults>
</compile_context>

<pallas_src>
import functools

import jax
import jax.numpy as jnp
from jax.experimental import pallas as pl
from jax.experimental.pallas import tpu as pltpu


_VMEM_LIMIT_BYTES = 32 * 1024 * 1024   # explicit cap; worst tile set here ~7 MiB


# -----------------------------------------------------------------------------
# helpers
# -----------------------------------------------------------------------------
def _round_up(x, m):
    return (x + m - 1) // m * m


def _pad2d(a, rows, cols):
    r, c = a.shape
    if r == rows and c == cols:
        return a
    return jnp.pad(a, ((0, rows - r), (0, cols - c)))


def _pick_tiles(M, N, *, allow_n_split=True):
    """Single-K-step tiling. Returns (tm, tn, Mp); N is never padded."""
    Mp = _round_up(M, 16)                 # bf16 sublane packing on the x tile
    if Mp > 256:
        tm = 256
        Mp = _round_up(M, 256)
    else:
        tm = Mp
    tn = N
    if allow_n_split and N > 512 and N % 128 == 0:
        for cand in (512, 384, 256, 128):
            if N % cand == 0:
                tn = cand
                break
    # Give v7x's second TensorCore work: make sure at least one parallel axis
    # has >= 2 blocks whenever the problem is big enough to split (the extra
    # grid step is negligible on 1-TC v5e/v6e).
    if (Mp // tm) * (N // tn) == 1:
        if Mp >= 32:
            Mp = _round_up(Mp, 32)
            tm = Mp // 2
        elif allow_n_split and N % 256 == 0:
            tn = N // 2
    return tm, tn, Mp


# -----------------------------------------------------------------------------
# Pallas kernels (single K step: one dot per output tile, bias/ReLU fused)
# -----------------------------------------------------------------------------
def _mm_bias_kernel(x_ref, w_ref, b_ref, o_ref, *, relu):
    acc = jnp.dot(x_ref[...], w_ref[...], preferred_element_type=jnp.float32)
    acc = acc + b_ref[...]
    if relu:
        acc = jnp.maximum(acc, 0.0)
    o_ref[...] = acc.astype(o_ref.dtype)


def _mm_quant_kernel(x_ref, w_ref, b_ref, cb_ref, o_ref):
    """z_e = x @ w + b ; idx = argmax(z_e, -1) ; o = codebook[idx]."""
    z_e = jnp.dot(x_ref[...], w_ref[...], preferred_element_type=jnp.float32)
    z_e = z_e + b_ref[...]                                    # (tm, code_dim)
    tm, code_dim = z_e.shape
    lane = jax.lax.broadcasted_iota(jnp.int32, (tm, code_dim), 1)
    m = jnp.max(z_e, axis=-1, keepdims=True)
    # first (lowest-lane) maximum == torch.argmax tie-breaking
    idx = jnp.min(jnp.where(z_e == m, lane, code_dim), axis=-1, keepdims=True)
    Sp = cb_ref.shape[0]
    sel = jax.lax.broadcasted_iota(jnp.int32, (tm, Sp), 1)
    onehot = (sel == idx).astype(jnp.float32)                 # (tm, Sp)
    o_ref[...] = jnp.dot(onehot, cb_ref[...],                 # exact gather
                         preferred_element_type=jnp.float32
                         ).astype(o_ref.dtype)


# -----------------------------------------------------------------------------
# Pallas wrappers
# -----------------------------------------------------------------------------
def pallas_matmul_bias(x, w, b, *, relu, out_dtype):
    """o = x @ w + b (optional ReLU). x: (M, K) bf16, w: (Kp, N) bf16 packed."""
    M, _ = x.shape
    Kp, N = w.shape
    tm, tn, Mp = _pick_tiles(M, N)
    xp = _pad2d(x, Mp, Kp)
    grid = (Mp // tm, N // tn)
    out = pl.pallas_call(
        functools.partial(_mm_bias_kernel, relu=relu),
        out_shape=jax.ShapeDtypeStruct((Mp, N), out_dtype),
        grid=grid,
        in_specs=[
            pl.BlockSpec((tm, Kp), lambda i, j: (i, 0)),
            pl.BlockSpec((Kp, tn), lambda i, j: (0, j)),
            pl.BlockSpec((1, tn), lambda i, j: (0, j)),
        ],
        out_specs=pl.BlockSpec((tm, tn), lambda i, j: (i, j)),
        compiler_params=pltpu.CompilerParams(
            dimension_semantics=("parallel", "parallel"),
            vmem_limit_bytes=_VMEM_LIMIT_BYTES),
        cost_estimate=pl.CostEstimate(
            flops=2 * Mp * Kp * N, transcendentals=0,
            bytes_accessed=(xp.size * 2 + w.size * 2 + b.size * 4
                            + Mp * N * jnp.dtype(out_dtype).itemsize)),
    )(xp, w, b)
    return out if Mp == M else out[:M]


def pallas_matmul_quantize(x, w, b, codebook):
    """Fused: z_e = x @ w + b ; z_q = codebook[argmax(z_e, -1)] (f32 out)."""
    M, _ = x.shape
    Kp, code_dim = w.shape
    Sp, D = codebook.shape
    # TODO(synk): multi-tile argmax epilogue for code_dim > 512.
    assert code_dim <= 512
    tm, _, Mp = _pick_tiles(M, code_dim, allow_n_split=False)
    xp = _pad2d(x, Mp, Kp)
    grid = (Mp // tm,)
    out = pl.pallas_call(
        _mm_quant_kernel,
        out_shape=jax.ShapeDtypeStruct((Mp, D), jnp.float32),
        grid=grid,
        in_specs=[
            pl.BlockSpec((tm, Kp), lambda i: (i, 0)),
            pl.BlockSpec((Kp, code_dim), lambda i: (0, 0)),
            pl.BlockSpec((1, code_dim), lambda i: (0, 0)),
            pl.BlockSpec((Sp, D), lambda i: (0, 0)),
        ],
        out_specs=pl.BlockSpec((tm, D), lambda i: (i, 0)),
        compiler_params=pltpu.CompilerParams(
            dimension_semantics=("parallel",),
            vmem_limit_bytes=_VMEM_LIMIT_BYTES),
        cost_estimate=pl.CostEstimate(
            flops=2 * Mp * Kp * code_dim + 2 * Mp * Sp * D, transcendentals=0,
            bytes_accessed=(xp.size * 2 + w.size * 2 + b.size * 4
                            + codebook.size * 4 + Mp * D * 4)),
    )(xp, w, b, codebook)
    return out if Mp == M else out[:M]


# -----------------------------------------------------------------------------
# Plain-JAX glue: im2col (bf16), pixel-shuffle
# -----------------------------------------------------------------------------
def _im2col(x_nhwc, k, stride, pad):
    """Extract k*k patches. Returns (B*Ho*Wo, k*k*C) and (B, Ho, Wo)."""
    x = jnp.pad(x_nhwc, ((0, 0), (pad, pad), (pad, pad), (0, 0)))
    B, Hp, Wp, C = x.shape
    Ho = (Hp - k) // stride + 1
    Wo = (Wp - k) // stride + 1
    patches = []
    for i in range(k):
        for j in range(k):
            patches.append(
                x[:, i:i + stride * Ho:stride, j:j + stride * Wo:stride, :])
    p = jnp.stack(patches, axis=3)                 # (B, Ho, Wo, k*k, C)
    return p.reshape(B * Ho * Wo, k * k * C), (B, Ho, Wo)


def conv2d(x_nhwc, w_mat, b_row, k, stride, pad, *, relu, out_dtype):
    """PyTorch-semantics Conv2d (cross-correlation) on NHWC data."""
    out_ch = w_mat.shape[1]
    patches, (B, Ho, Wo) = _im2col(x_nhwc.astype(jnp.bfloat16), k, stride, pad)
    out = pallas_matmul_bias(patches, w_mat, b_row, relu=relu,
                             out_dtype=out_dtype)
    return out.reshape(B, Ho, Wo, out_ch)


def conv2d_quantize(x_nhwc, w_mat, b_row, codebook, k, stride, pad):
    """Final encoder conv with the quantization step fused into its epilogue."""
    D = codebook.shape[1]
    patches, (B, Ho, Wo) = _im2col(x_nhwc.astype(jnp.bfloat16), k, stride, pad)
    z_q = pallas_matmul_quantize(patches, w_mat, b_row, codebook)
    return z_q.reshape(B, Ho, Wo, D)


def conv_transpose2d(x_nhwc, w_comb, b_comb, *, relu, out_dtype):
    """PyTorch ConvTranspose2d(k=4, s=2, p=1) via subpixel decomposition."""
    out_ch = w_comb.shape[1] // 4
    B, H, W, _ = x_nhwc.shape
    patches, (_, Ho, Wo) = _im2col(x_nhwc.astype(jnp.bfloat16), 3, 1, 1)
    out = pallas_matmul_bias(patches, w_comb, b_comb, relu=relu,
                             out_dtype=out_dtype)              # (B*H*W, 4*out)
    out = out.reshape(B, Ho, Wo, 2, 2, out_ch)                 # (..., r, c, o)
    out = jnp.transpose(out, (0, 1, 3, 2, 4, 5)).reshape(B, 2 * Ho, 2 * Wo,
                                                         out_ch)
    return out


# -----------------------------------------------------------------------------
# One-time parameter packing (hoisted out of the jitted forward pass)
# -----------------------------------------------------------------------------
def _convT_combined_weight(w_iohw):
    """Subpixel decomposition of ConvTranspose2d(k=4,s=2,p=1).

    Returns (9*in_ch, 4*out_ch): one stride-1 3x3 conv over the 1-padded input
    producing all 4 output phases (r, c) at once (pixel-shuffle afterwards).
    Tap mapping: kh = 3 + r - 2*dh, kw = 3 + c - 2*dw (zero if out of range).
    """
    in_ch, out_ch, k, _ = w_iohw.shape
    assert k == 4
    rows = []
    for dh in range(3):
        for dw in range(3):
            phase_mats = []
            for r in range(2):
                for c in range(2):
                    kh = 3 + r - 2 * dh
                    kw = 3 + c - 2 * dw
                    if 0 <= kh < 4 and 0 <= kw < 4:
                        phase_mats.append(w_iohw[:, :, kh, kw])
                    else:
                        phase_mats.append(
                            jnp.zeros((in_ch, out_ch), w_iohw.dtype))
            rows.append(jnp.concatenate(phase_mats, axis=1))    # (in, 4*out)
    return jnp.concatenate(rows, axis=0)                        # (9*in, 4*out)


def prepare_params(raw):
    """Pack weights once: bf16 matmul matrices (K padded to x16), f32 biases."""
    def conv_w(w_oihw):
        out_ch, in_ch, k, _ = w_oihw.shape
        m = jnp.transpose(w_oihw, (2, 3, 1, 0)).reshape(k * k * in_ch, out_ch)
        return _pad2d(m.astype(jnp.bfloat16), _round_up(m.shape[0], 16), out_ch)

    def convt_w(w_iohw):
        m = _convT_combined_weight(w_iohw)
        return _pad2d(m.astype(jnp.bfloat16), _round_up(m.shape[0], 16),
                      m.shape[1])

    def bias(b):
        return b.reshape(1, -1).astype(jnp.float32)

    S, D = raw["codebook"].shape
    return {
        "e1_w": conv_w(raw["e1_w"]), "e1_b": bias(raw["e1_b"]),
        "e2_w": conv_w(raw["e2_w"]), "e2_b": bias(raw["e2_b"]),
        "e3_w": conv_w(raw["e3_w"]), "e3_b": bias(raw["e3_b"]),
        "codebook": _pad2d(raw["codebook"].astype(jnp.float32),
                           _round_up(S, 8), D),
        "d1_w": convt_w(raw["d1_w"]), "d1_b": bias(jnp.tile(raw["d1_b"], 4)),
        "d2_w": convt_w(raw["d2_w"]), "d2_b": bias(jnp.tile(raw["d2_b"], 4)),
        "d3_w": convt_w(raw["d3_w"]), "d3_b": bias(jnp.tile(raw["d3_b"], 4)),
    }


def init_params(key, codebook_size, code_dim):
    ks = jax.random.split(key, 10)
    s = 0.05
    return {
        "e1_w": jax.random.normal(ks[0], (64, 3, 4, 4), jnp.float32) * s,
        "e1_b": jax.random.normal(ks[1], (64,), jnp.float32) * s,
        "e2_w": jax.random.normal(ks[2], (128, 64, 4, 4), jnp.float32) * s,
        "e2_b": jax.random.normal(ks[3], (128,), jnp.float32) * s,
        "e3_w": jax.random.normal(ks[4], (code_dim, 128, 4, 4), jnp.float32) * s,
        "e3_b": jax.random.normal(ks[5], (code_dim,), jnp.float32) * s,
        "codebook": jax.random.normal(ks[6], (codebook_size, code_dim),
                                      jnp.float32),
        "d1_w": jax.random.normal(ks[7], (code_dim, 128, 4, 4), jnp.float32) * s,
        "d1_b": jnp.zeros((128,), jnp.float32),
        "d2_w": jax.random.normal(ks[8], (128, 64, 4, 4), jnp.float32) * s,
        "d2_b": jnp.zeros((64,), jnp.float32),
        "d3_w": jax.random.normal(ks[9], (64, 3, 4, 4), jnp.float32) * s,
        "d3_b": jnp.zeros((3,), jnp.float32),
    }


# -----------------------------------------------------------------------------
# RQVAE forward
# -----------------------------------------------------------------------------
def rqvae_forward(params, x_nchw):
    """Returns (recon_x, z_q) in NCHW, matching the PyTorch module."""
    x = jnp.transpose(x_nchw, (0, 2, 3, 1))                     # NHWC

    # ---- encoder (bf16 activations, f32 MXU accumulation) -------------------
    h = conv2d(x, params["e1_w"], params["e1_b"], 4, 2, 1,
               relu=True, out_dtype=jnp.bfloat16)
    h = conv2d(h, params["e2_w"], params["e2_b"], 4, 2, 1,
               relu=True, out_dtype=jnp.bfloat16)

    # ---- 3rd encoder conv + quantization fused into one kernel --------------
    z_q_nhwc = conv2d_quantize(h, params["e3_w"], params["e3_b"],
                               params["codebook"], 4, 2, 1)     # f32
    z_q_nchw = jnp.transpose(z_q_nhwc, (0, 3, 1, 2))            # == PyTorch z_q

    # ---- decoder (subpixel transposed convs) --------------------------------
    d = conv_transpose2d(z_q_nhwc, params["d1_w"], params["d1_b"],
                         relu=True, out_dtype=jnp.bfloat16)
    d = conv_transpose2d(d, params["d2_w"], params["d2_b"],
                         relu=True, out_dtype=jnp.bfloat16)
    recon = conv_transpose2d(d, params["d3_w"], params["d3_b"],
                             relu=False, out_dtype=jnp.float32)
    recon_nchw = jnp.transpose(recon, (0, 3, 1, 2))
    return recon_nchw, z_q_nchw


if __name__ == "__main__":
    codebook_size = 16
    code_dim = 8
    B, C, H, W = 2, 3, 16, 16

    key = jax.random.PRNGKey(0)
    k_param, k_x = jax.random.split(key)
    raw_params = init_params(k_param, codebook_size, code_dim)
    params = prepare_params(raw_params)           # one-time weight packing
    x = jax.random.normal(k_x, (B, C, H, W), jnp.float32)

    fwd = jax.jit(rqvae_forward)
    recon_x, z_q = fwd(params, x)
    jax.block_until_ready((recon_x, z_q))

    assert recon_x.shape == (B, 3, H, W), recon_x.shape
    assert z_q.shape == (B, code_dim, H // 8, W // 8), z_q.shape
    assert bool(jnp.all(jnp.isfinite(recon_x))) and bool(jnp.all(jnp.isfinite(z_q)))
    print("KERNEL_OK")
</pallas_src>

<mosaic_0001>
module attributes {stable_mosaic.version = 11 : i64} {
  func.func @_mm_bias_kernel(%arg0: i32, %arg1: i32, %arg2: memref<64x48xbf16, #tpu.memory_space<vmem>>, %arg3: memref<48x64xbf16, #tpu.memory_space<vmem>>, %arg4: memref<1x64xf32, #tpu.memory_space<vmem>>, %arg5: memref<64x64xbf16, #tpu.memory_space<vmem>>) attributes {dimension_semantics = [#tpu.dimension_semantics<parallel>, #tpu.dimension_semantics<parallel>], iteration_bounds = array<i64: 2, 1>, scalar_prefetch = 0 : i64, scratch_operands = 0 : i64, tpu.core_type = #tpu.core_type<tc>, window_params = [{transform_indices = @transform_0, window_bounds = array<i64: 64, 48>}, {transform_indices = @transform_1, window_bounds = array<i64: 48, 64>}, {transform_indices = @transform_2, window_bounds = array<i64: 1, 64>}, {transform_indices = @transform_3, window_bounds = array<i64: 64, 64>}]} {
    %c0 = arith.constant 0 : index
    %c0_0 = arith.constant 0 : index
    %0 = vector.load %arg2[%c0, %c0_0] : memref<64x48xbf16, #tpu.memory_space<vmem>>, vector<64x48xbf16>
    %c0_1 = arith.constant 0 : index
    %c0_2 = arith.constant 0 : index
    %1 = vector.load %arg3[%c0_1, %c0_2] : memref<48x64xbf16, #tpu.memory_space<vmem>>, vector<48x64xbf16>
    %cst = arith.constant dense<0.000000e+00> : vector<64x64xf32>
    %2 = tpu.matmul %0, %1, %cst {dimension_numbers = #tpu.dot_dimension_numbers<[1], [0], [0], [1], [0, 0, 1, 1], [], []>} : vector<64x48xbf16>, vector<48x64xbf16>, vector<64x64xf32> -> vector<64x64xf32>
    %c0_3 = arith.constant 0 : index
    %c0_4 = arith.constant 0 : index
    %3 = vector.load %arg4[%c0_3, %c0_4] : memref<1x64xf32, #tpu.memory_space<vmem>>, vector<1x64xf32>
    %4 = vector.broadcast %3 : vector<1x64xf32> to vector<64x64xf32>
    %5 = arith.addf %2, %4 : vector<64x64xf32>
    %cst_5 = arith.constant 0.000000e+00 : f32
    %6 = vector.broadcast %cst_5 : f32 to vector<64x64xf32>
    %7 = arith.maximumf %5, %6 : vector<64x64xf32>
    %8 = arith.truncf %7 : vector<64x64xf32> to vector<64x64xbf16>
    %c0_6 = arith.constant 0 : index
    %c0_7 = arith.constant 0 : index
    %9 = vector.load %arg5[%c0_6, %c0_7] : memref<64x64xbf16, #tpu.memory_space<vmem>>, vector<64x64xbf16>
    tpu.vector_store %arg5[%c0_6, %c0_7], %8 {strides = array<i32>} : memref<64x64xbf16, #tpu.memory_space<vmem>>, vector<64x64xbf16>,
    return
  }
  func.func @transform_0(%arg0: i32, %arg1: i32) -> (i32, i32) {
    %c0_i32 = arith.constant 0 : i32
    %c0_i32_0 = arith.constant 0 : i32
    return %arg0, %c0_i32 : i32, i32
  }
  func.func @transform_1(%arg0: i32, %arg1: i32) -> (i32, i32) {
    %c0_i32 = arith.constant 0 : i32
    %c0_i32_0 = arith.constant 0 : i32
    return %c0_i32, %arg1 : i32, i32
  }
  func.func @transform_2(%arg0: i32, %arg1: i32) -> (i32, i32) {
    %c0_i32 = arith.constant 0 : i32
    %c0_i32_0 = arith.constant 0 : i32
    return %c0_i32, %arg1 : i32, i32
  }
  func.func @transform_3(%arg0: i32, %arg1: i32) -> (i32, i32) {
    %c0_i32 = arith.constant 0 : i32
    return %arg0, %arg1 : i32, i32
  }
}

module attributes {stable_mosaic.version = 11 : i64} {
  func.func @_mm_bias_kernel(%arg0: i32, %arg1: i32, %arg2: memref<16x1024xbf16, #tpu.memory_space<vmem>>, %arg3: memref<1024x128xbf16, #tpu.memory_space<vmem>>, %arg4: memref<1x128xf32, #tpu.memory_space<vmem>>, %arg5: memref<16x128xbf16, #tpu.memory_space<vmem>>) attributes {dimension_semantics = [#tpu.dimension_semantics<parallel>, #tpu.dimension_semantics<parallel>], iteration_bounds = array<i64: 2, 1>, scalar_prefetch = 0 : i64, scratch_operands = 0 : i64, tpu.core_type = #tpu.core_type<tc>, window_params = [{transform_indices = @transform_0, window_bounds = array<i64: 16, 1024>}, {transform_indices = @transform_1, window_bounds = array<i64: 1024, 128>}, {transform_indices = @transform_2, window_bounds = array<i64: 1, 128>}, {transform_indices = @transform_3, window_bounds = array<i64: 16, 128>}]} {
    %c0 = arith.constant 0 : index
    %c0_0 = arith.constant 0 : index
    %0 = vector.load %arg2[%c0, %c0_0] : memref<16x1024xbf16, #tpu.memory_space<vmem>>, vector<16x1024xbf16>
    %c0_1 = arith.constant 0 : index
    %c0_2 = arith.constant 0 : index
    %1 = vector.load %arg3[%c0_1, %c0_2] : memref<1024x128xbf16, #tpu.memory_space<vmem>>, vector<1024x128xbf16>
    %cst = arith.constant dense<0.000000e+00> : vector<16x128xf32>
    %2 = tpu.matmul %0, %1, %cst {dimension_numbers = #tpu.dot_dimension_numbers<[1], [0], [0], [1], [0, 0, 1, 1], [], []>} : vector<16x1024xbf16>, vector<1024x128xbf16>, vector<16x128xf32> -> vector<16x128xf32>
    %c0_3 = arith.constant 0 : index
    %c0_4 = arith.constant 0 : index
    %3 = vector.load %arg4[%c0_3, %c0_4] : memref<1x128xf32, #tpu.memory_space<vmem>>, vector<1x128xf32>
    %4 = vector.broadcast %3 : vector<1x128xf32> to vector<16x128xf32>
    %5 = arith.addf %2, %4 : vector<16x128xf32>
    %cst_5 = arith.constant 0.000000e+00 : f32
    %6 = vector.broadcast %cst_5 : f32 to vector<16x128xf32>
    %7 = arith.maximumf %5, %6 : vector<16x128xf32>
    %8 = arith.truncf %7 : vector<16x128xf32> to vector<16x128xbf16>
    %c0_6 = arith.constant 0 : index
    %c0_7 = arith.constant 0 : index
    %9 = vector.load %arg5[%c0_6, %c0_7] : memref<16x128xbf16, #tpu.memory_space<vmem>>, vector<16x128xbf16>
    tpu.vector_store %arg5[%c0_6, %c0_7], %8 {strides = array<i32>} : memref<16x128xbf16, #tpu.memory_space<vmem>>, vector<16x128xbf16>,
    return
  }
  func.func @transform_0(%arg0: i32, %arg1: i32) -> (i32, i32) {
    %c0_i32 = arith.constant 0 : i32
    %c0_i32_0 = arith.constant 0 : i32
    return %arg0, %c0_i32 : i32, i32
  }
  func.func @transform_1(%arg0: i32, %arg1: i32) -> (i32, i32) {
    %c0_i32 = arith.constant 0 : i32
    %c0_i32_0 = arith.constant 0 : i32
    return %c0_i32, %arg1 : i32, i32
  }
  func.func @transform_2(%arg0: i32, %arg1: i32) -> (i32, i32) {
    %c0_i32 = arith.constant 0 : i32
    %c0_i32_0 = arith.constant 0 : i32
    return %c0_i32, %arg1 : i32, i32
  }
  func.func @transform_3(%arg0: i32, %arg1: i32) -> (i32, i32) {
    %c0_i32 = arith.constant 0 : i32
    return %arg0, %arg1 : i32, i32
  }
}

module attributes {stable_mosaic.version = 11 : i64} {
  func.func @_mm_quant_kernel(%arg0: i32, %arg1: memref<16x2048xbf16, #tpu.memory_space<vmem>>, %arg2: memref<2048x8xbf16, #tpu.memory_space<vmem>>, %arg3: memref<1x8xf32, #tpu.memory_space<vmem>>, %arg4: memref<16x8xf32, #tpu.memory_space<vmem>>, %arg5: memref<16x8xf32, #tpu.memory_space<vmem>>) attributes {dimension_semantics = [#tpu.dimension_semantics<parallel>], iteration_bounds = array<i64: 1>, scalar_prefetch = 0 : i64, scratch_operands = 0 : i64, tpu.core_type = #tpu.core_type<tc>, window_params = [{transform_indices = @transform_0, window_bounds = array<i64: 16, 2048>}, {pipeline_mode = #tpu.pipeline_mode<synchronous>, transform_indices = @transform_1, window_bounds = array<i64: 2048, 8>}, {pipeline_mode = #tpu.pipeline_mode<synchronous>, transform_indices = @transform_2, window_bounds = array<i64: 1, 8>}, {pipeline_mode = #tpu.pipeline_mode<synchronous>, transform_indices = @transform_3, window_bounds = array<i64: 16, 8>}, {transform_indices = @transform_4, window_bounds = array<i64: 16, 8>}]} {
    %c0 = arith.constant 0 : index
    %c0_0 = arith.constant 0 : index
    %0 = vector.load %arg1[%c0, %c0_0] : memref<16x2048xbf16, #tpu.memory_space<vmem>>, vector<16x2048xbf16>
    %c0_1 = arith.constant 0 : index
    %c0_2 = arith.constant 0 : index
    %1 = vector.load %arg2[%c0_1, %c0_2] : memref<2048x8xbf16, #tpu.memory_space<vmem>>, vector<2048x8xbf16>
    %cst = arith.constant dense<0.000000e+00> : vector<16x8xf32>
    %2 = tpu.matmul %0, %1, %cst {dimension_numbers = #tpu.dot_dimension_numbers<[1], [0], [0], [1], [0, 0, 1, 1], [], []>} : vector<16x2048xbf16>, vector<2048x8xbf16>, vector<16x8xf32> -> vector<16x8xf32>
    %c0_3 = arith.constant 0 : index
    %c0_4 = arith.constant 0 : index
    %3 = vector.load %arg3[%c0_3, %c0_4] : memref<1x8xf32, #tpu.memory_space<vmem>>, vector<1x8xf32>
    %4 = vector.broadcast %3 : vector<1x8xf32> to vector<16x8xf32>
    %5 = arith.addf %2, %4 : vector<16x8xf32>
    %6 = tpu.iota {dimensions = array<i32: 1>} : vector<16x8xi32>
    %cst_5 = arith.constant dense<0xFF800000> : vector<16xf32>
    %7 = vector.multi_reduction <maximumf>, %5, %cst_5 [1] : vector<16x8xf32> to vector<16xf32>
    %8 = vector.shape_cast %7 : vector<16xf32> to vector<16x1xf32>
    %9 = vector.broadcast %8 : vector<16x1xf32> to vector<16x8xf32>
    %10 = arith.cmpf oeq, %5, %9 : vector<16x8xf32>
    %c8_i32 = arith.constant 8 : i32
    %11 = vector.broadcast %c8_i32 : i32 to vector<16x8xi32>
    %12 = arith.select %10, %6, %11 : vector<16x8xi1>, vector<16x8xi32>
    %cst_6 = arith.constant dense<2147483647> : vector<16xi32>
    %13 = vector.multi_reduction <minsi>, %12, %cst_6 [1] : vector<16x8xi32> to vector<16xi32>
    %14 = vector.shape_cast %13 : vector<16xi32> to vector<16x1xi32>
    %15 = tpu.iota {dimensions = array<i32: 1>} : vector<16x16xi32>
    %16 = vector.broadcast %14 : vector<16x1xi32> to vector<16x16xi32>
    %17 = arith.cmpi eq, %15, %16 : vector<16x16xi32>
    %18 = arith.extui %17 : vector<16x16xi1> to vector<16x16xi32>
    %19 = arith.sitofp %18 : vector<16x16xi32> to vector<16x16xf32>
    %c0_7 = arith.constant 0 : index
    %c0_8 = arith.constant 0 : index
    %20 = vector.load %arg4[%c0_7, %c0_8] : memref<16x8xf32, #tpu.memory_space<vmem>>, vector<16x8xf32>
    %cst_9 = arith.constant dense<0.000000e+00> : vector<16x8xf32>
    %21 = tpu.matmul %19, %20, %cst_9 {dimension_numbers = #tpu.dot_dimension_numbers<[1], [0], [0], [1], [0, 0, 1, 1], [], []>} : vector<16x16xf32>, vector<16x8xf32>, vector<16x8xf32> -> vector<16x8xf32>
    %c0_10 = arith.constant 0 : index
    %c0_11 = arith.constant 0 : index
    %22 = vector.load %arg5[%c0_10, %c0_11] : memref<16x8xf32, #tpu.memory_space<vmem>>, vector<16x8xf32>
    tpu.vector_store %arg5[%c0_10, %c0_11], %21 {strides = array<i32>} : memref<16x8xf32, #tpu.memory_space<vmem>>, vector<16x8xf32>,
    return
  }
  func.func @transform_0(%arg0: i32) -> (i32, i32) {
    %c0_i32 = arith.constant 0 : i32
    %c0_i32_0 = arith.constant 0 : i32
    return %arg0, %c0_i32 : i32, i32
  }
  func.func @transform_1(%arg0: i32) -> (i32, i32) {
    %c0_i32 = arith.constant 0 : i32
    %c0_i32_0 = arith.constant 0 : i32
    %c0_i32_1 = arith.constant 0 : i32
    return %c0_i32, %c0_i32_0 : i32, i32
  }
  func.func @transform_2(%arg0: i32) -> (i32, i32) {
    %c0_i32 = arith.constant 0 : i32
    %c0_i32_0 = arith.constant 0 : i32
    %c0_i32_1 = arith.constant 0 : i32
    return %c0_i32, %c0_i32_0 : i32, i32
  }
  func.func @transform_3(%arg0: i32) -> (i32, i32) {
    %c0_i32 = arith.constant 0 : i32
    %c0_i32_0 = arith.constant 0 : i32
    %c0_i32_1 = arith.constant 0 : i32
    return %c0_i32, %c0_i32_0 : i32, i32
  }
  func.func @transform_4(%arg0: i32) -> (i32, i32) {
    %c0_i32 = arith.constant 0 : i32
    %c0_i32_0 = arith.constant 0 : i32
    return %arg0, %c0_i32 : i32, i32
  }
}

module attributes {stable_mosaic.version = 11 : i64} {
  func.func @_mm_bias_kernel(%arg0: i32, %arg1: i32, %arg2: memref<16x80xbf16, #tpu.memory_space<vmem>>, %arg3: memref<80x256xbf16, #tpu.memory_space<vmem>>, %arg4: memref<1x256xf32, #tpu.memory_space<vmem>>, %arg5: memref<16x256xbf16, #tpu.memory_space<vmem>>) attributes {dimension_semantics = [#tpu.dimension_semantics<parallel>, #tpu.dimension_semantics<parallel>], iteration_bounds = array<i64: 1, 2>, scalar_prefetch = 0 : i64, scratch_operands = 0 : i64, tpu.core_type = #tpu.core_type<tc>, window_params = [{transform_indices = @transform_0, window_bounds = array<i64: 16, 80>}, {transform_indices = @transform_1, window_bounds = array<i64: 80, 256>}, {transform_indices = @transform_2, window_bounds = array<i64: 1, 256>}, {transform_indices = @transform_3, window_bounds = array<i64: 16, 256>}]} {
    %c0 = arith.constant 0 : index
    %c0_0 = arith.constant 0 : index
    %0 = vector.load %arg2[%c0, %c0_0] : memref<16x80xbf16, #tpu.memory_space<vmem>>, vector<16x80xbf16>
    %c0_1 = arith.constant 0 : index
    %c0_2 = arith.constant 0 : index
    %1 = vector.load %arg3[%c0_1, %c0_2] : memref<80x256xbf16, #tpu.memory_space<vmem>>, vector<80x256xbf16>
    %cst = arith.constant dense<0.000000e+00> : vector<16x256xf32>
    %2 = tpu.matmul %0, %1, %cst {dimension_numbers = #tpu.dot_dimension_numbers<[1], [0], [0], [1], [0, 0, 1, 1], [], []>} : vector<16x80xbf16>, vector<80x256xbf16>, vector<16x256xf32> -> vector<16x256xf32>
    %c0_3 = arith.constant 0 : index
    %c0_4 = arith.constant 0 : index
    %3 = vector.load %arg4[%c0_3, %c0_4] : memref<1x256xf32, #tpu.memory_space<vmem>>, vector<1x256xf32>
    %4 = vector.broadcast %3 : vector<1x256xf32> to vector<16x256xf32>
    %5 = arith.addf %2, %4 : vector<16x256xf32>
    %cst_5 = arith.constant 0.000000e+00 : f32
    %6 = vector.broadcast %cst_5 : f32 to vector<16x256xf32>
    %7 = arith.maximumf %5, %6 : vector<16x256xf32>
    %8 = arith.truncf %7 : vector<16x256xf32> to vector<16x256xbf16>
    %c0_6 = arith.constant 0 : index
    %c0_7 = arith.constant 0 : index
    %9 = vector.load %arg5[%c0_6, %c0_7] : memref<16x256xbf16, #tpu.memory_space<vmem>>, vector<16x256xbf16>
    tpu.vector_store %arg5[%c0_6, %c0_7], %8 {strides = array<i32>} : memref<16x256xbf16, #tpu.memory_space<vmem>>, vector<16x256xbf16>,
    return
  }
  func.func @transform_0(%arg0: i32, %arg1: i32) -> (i32, i32) {
    %c0_i32 = arith.constant 0 : i32
    %c0_i32_0 = arith.constant 0 : i32
    return %arg0, %c0_i32 : i32, i32
  }
  func.func @transform_1(%arg0: i32, %arg1: i32) -> (i32, i32) {
    %c0_i32 = arith.constant 0 : i32
    %c0_i32_0 = arith.constant 0 : i32
    return %c0_i32, %arg1 : i32, i32
  }
  func.func @transform_2(%arg0: i32, %arg1: i32) -> (i32, i32) {
    %c0_i32 = arith.constant 0 : i32
    %c0_i32_0 = arith.constant 0 : i32
    return %c0_i32, %arg1 : i32, i32
  }
  func.func @transform_3(%arg0: i32, %arg1: i32) -> (i32, i32) {
    %c0_i32 = arith.constant 0 : i32
    return %arg0, %arg1 : i32, i32
  }
}

module attributes {stable_mosaic.version = 11 : i64} {
  func.func @_mm_bias_kernel(%arg0: i32, %arg1: i32, %arg2: memref<16x1152xbf16, #tpu.memory_space<vmem>>, %arg3: memref<1152x256xbf16, #tpu.memory_space<vmem>>, %arg4: memref<1x256xf32, #tpu.memory_space<vmem>>, %arg5: memref<16x256xbf16, #tpu.memory_space<vmem>>) attributes {dimension_semantics = [#tpu.dimension_semantics<parallel>, #tpu.dimension_semantics<parallel>], iteration_bounds = array<i64: 2, 1>, scalar_prefetch = 0 : i64, scratch_operands = 0 : i64, tpu.core_type = #tpu.core_type<tc>, window_params = [{transform_indices = @transform_0, window_bounds = array<i64: 16, 1152>}, {transform_indices = @transform_1, window_bounds = array<i64: 1152, 256>}, {transform_indices = @transform_2, window_bounds = array<i64: 1, 256>}, {transform_indices = @transform_3, window_bounds = array<i64: 16, 256>}]} {
    %c0 = arith.constant 0 : index
    %c0_0 = arith.constant 0 : index
    %0 = vector.load %arg2[%c0, %c0_0] : memref<16x1152xbf16, #tpu.memory_space<vmem>>, vector<16x1152xbf16>
    %c0_1 = arith.constant 0 : index
    %c0_2 = arith.constant 0 : index
    %1 = vector.load %arg3[%c0_1, %c0_2] : memref<1152x256xbf16, #tpu.memory_space<vmem>>, vector<1152x256xbf16>
    %cst = arith.constant dense<0.000000e+00> : vector<16x256xf32>
    %2 = tpu.matmul %0, %1, %cst {dimension_numbers = #tpu.dot_dimension_numbers<[1], [0], [0], [1], [0, 0, 1, 1], [], []>} : vector<16x1152xbf16>, vector<1152x256xbf16>, vector<16x256xf32> -> vector<16x256xf32>
    %c0_3 = arith.constant 0 : index
    %c0_4 = arith.constant 0 : index
    %3 = vector.load %arg4[%c0_3, %c0_4] : memref<1x256xf32, #tpu.memory_space<vmem>>, vector<1x256xf32>
    %4 = vector.broadcast %3 : vector<1x256xf32> to vector<16x256xf32>
    %5 = arith.addf %2, %4 : vector<16x256xf32>
    %cst_5 = arith.constant 0.000000e+00 : f32
    %6 = vector.broadcast %cst_5 : f32 to vector<16x256xf32>
    %7 = arith.maximumf %5, %6 : vector<16x256xf32>
    %8 = arith.truncf %7 : vector<16x256xf32> to vector<16x256xbf16>
    %c0_6 = arith.constant 0 : index
    %c0_7 = arith.constant 0 : index
    %9 = vector.load %arg5[%c0_6, %c0_7] : memref<16x256xbf16, #tpu.memory_space<vmem>>, vector<16x256xbf16>
    tpu.vector_store %arg5[%c0_6, %c0_7], %8 {strides = array<i32>} : memref<16x256xbf16, #tpu.memory_space<vmem>>, vector<16x256xbf16>,
    return
  }
  func.func @transform_0(%arg0: i32, %arg1: i32) -> (i32, i32) {
    %c0_i32 = arith.constant 0 : i32
    %c0_i32_0 = arith.constant 0 : i32
    return %arg0, %c0_i32 : i32, i32
  }
  func.func @transform_1(%arg0: i32, %arg1: i32) -> (i32, i32) {
    %c0_i32 = arith.constant 0 : i32
    %c0_i32_0 = arith.constant 0 : i32
    return %c0_i32, %arg1 : i32, i32
  }
  func.func @transform_2(%arg0: i32, %arg1: i32) -> (i32, i32) {
    %c0_i32 = arith.constant 0 : i32
    %c0_i32_0 = arith.constant 0 : i32
    return %c0_i32, %arg1 : i32, i32
  }
  func.func @transform_3(%arg0: i32, %arg1: i32) -> (i32, i32) {
    %c0_i32 = arith.constant 0 : i32
    return %arg0, %arg1 : i32, i32
  }
}

module attributes {stable_mosaic.version = 11 : i64} {
  func.func @_mm_bias_kernel(%arg0: i32, %arg1: i32, %arg2: memref<64x576xbf16, #tpu.memory_space<vmem>>, %arg3: memref<576x12xbf16, #tpu.memory_space<vmem>>, %arg4: memref<1x12xf32, #tpu.memory_space<vmem>>, %arg5: memref<64x12xf32, #tpu.memory_space<vmem>>) attributes {dimension_semantics = [#tpu.dimension_semantics<parallel>, #tpu.dimension_semantics<parallel>], iteration_bounds = array<i64: 2, 1>, scalar_prefetch = 0 : i64, scratch_operands = 0 : i64, tpu.core_type = #tpu.core_type<tc>, window_params = [{transform_indices = @transform_0, window_bounds = array<i64: 64, 576>}, {transform_indices = @transform_1, window_bounds = array<i64: 576, 12>}, {transform_indices = @transform_2, window_bounds = array<i64: 1, 12>}, {transform_indices = @transform_3, window_bounds = array<i64: 64, 12>}]} {
    %c0 = arith.constant 0 : index
    %c0_0 = arith.constant 0 : index
    %0 = vector.load %arg2[%c0, %c0_0] : memref<64x576xbf16, #tpu.memory_space<vmem>>, vector<64x576xbf16>
    %c0_1 = arith.constant 0 : index
    %c0_2 = arith.constant 0 : index
    %1 = vector.load %arg3[%c0_1, %c0_2] : memref<576x12xbf16, #tpu.memory_space<vmem>>, vector<576x12xbf16>
    %cst = arith.constant dense<0.000000e+00> : vector<64x12xf32>
    %2 = tpu.matmul %0, %1, %cst {dimension_numbers = #tpu.dot_dimension_numbers<[1], [0], [0], [1], [0, 0, 1, 1], [], []>} : vector<64x576xbf16>, vector<576x12xbf16>, vector<64x12xf32> -> vector<64x12xf32>
    %c0_3 = arith.constant 0 : index
    %c0_4 = arith.constant 0 : index
    %3 = vector.load %arg4[%c0_3, %c0_4] : memref<1x12xf32, #tpu.memory_space<vmem>>, vector<1x12xf32>
    %4 = vector.broadcast %3 : vector<1x12xf32> to vector<64x12xf32>
    %5 = arith.addf %2, %4 : vector<64x12xf32>
    %c0_5 = arith.constant 0 : index
    %c0_6 = arith.constant 0 : index
    %6 = vector.load %arg5[%c0_5, %c0_6] : memref<64x12xf32, #tpu.memory_space<vmem>>, vector<64x12xf32>
    tpu.vector_store %arg5[%c0_5, %c0_6], %5 {strides = array<i32>} : memref<64x12xf32, #tpu.memory_space<vmem>>, vector<64x12xf32>,
    return
  }
  func.func @transform_0(%arg0: i32, %arg1: i32) -> (i32, i32) {
    %c0_i32 = arith.constant 0 : i32
    %c0_i32_0 = arith.constant 0 : i32
    return %arg0, %c0_i32 : i32, i32
  }
  func.func @transform_1(%arg0: i32, %arg1: i32) -> (i32, i32) {
    %c0_i32 = arith.constant 0 : i32
    %c0_i32_0 = arith.constant 0 : i32
    return %c0_i32, %arg1 : i32, i32
  }
  func.func @transform_2(%arg0: i32, %arg1: i32) -> (i32, i32) {
    %c0_i32 = arith.constant 0 : i32
    %c0_i32_0 = arith.constant 0 : i32
    return %c0_i32, %arg1 : i32, i32
  }
  func.func @transform_3(%arg0: i32, %arg1: i32) -> (i32, i32) {
    %c0_i32 = arith.constant 0 : i32
    return %arg0, %arg1 : i32, i32
  }
}

</mosaic_0001>

<bundles_post_ra>
// kernel: rqvae_forward.6
= control target key start
LH: loop header
LB: loop body
LE: loop exit
PB: predicated region body
PF: predicated region fallthrough
CT: control target
= control target key end

     0   :  { %s657_s12 = smov 0   ;;  %s659_s13 = smov 0   ;;  %s717_s0 = inlined_call_operand.vmem [shape: bf16[128,48], index: 0, kind: input, shape index: {}]   ;;  %s718_s1 = inlined_call_operand.vmem [shape: bf16[48,64], index: 1, kind: input, shape index: {}]   ;;  %s719_s2 = inlined_call_operand.vmem [shape: f32[1,64], index: 2, kind: input, shape index: {}]   ;;  %s720_s3 = inlined_call_operand.vmem [shape: bf16[128,64], index: 3, kind: output, shape index: {}]  }
   0x1   :  { %s661_s14 = smov 0  }
   0x2 LB: > { %s25_s15 = sadd.s32 1, %s631_s13  ;;  %p520_p0 = scmp.ge.s32.totalorder %s635_s14, 1  ;;  %s635_s14 = sphi %s661_s14, %s13_s14   ;;  %s631_s13 = sphi %s659_s13, %s722_s13   ;;  %s627_s12 = sphi %s657_s12, %s721_s12  }
   0x3   : > { %p27_p1 = scmp.ge.s32.totalorder %s25_s15, 2  ;;  %p169_p2 = scmp.lt.s32.totalorder %s635_s14, 3 }
   0x5   : > { %s724_s15 = smov (%p27_p1, %s25_s15), 0  ;;  %p170_p3 = pnand %p520_p0, %p169_p2 }
   0x6   : > { %v606_v0 = vld [vmem:[%s718_s1] sm:$0xff] (!%p170_p3)   ;;  %s521_s18 = sshll.u32 (!%p170_p3), %s627_s12, 3  ;;  %v607_v1 = vld [vmem:[%s718_s1 + $0x8] sm:$0xff] (!%p170_p3)   ;;  %v608_v2 = vld [vmem:[%s718_s1 + $0x10] sm:$0xff] (!%p170_p3)   ;;  %vm285_vm0 = vcmask (!%p170_p3), 392192   ;;  %vm403_vm1 = vcmask (!%p170_p3), 519168  }
   0x7   : > { %173 = sbr.rel (%p170_p3) target bundleno = 241 (0xf1), region = 32  ;;  %p204_p4 = scmp.lt.s32.totalorder (!%p170_p3), %s521_s18, 15  ;;  %562 = vmatprep.subr.bf16.mxu0 (!%p170_p3), %v606_v0  ;;  %576 = vmatprep.subr.bf16.mxu1 (!%p170_p3), %v606_v0  ;;  %v525_v7 = vld [vmem:[%s719_s2] ss:$0 sm:$0xff] (!%p170_p3) }
   0x8   : > { %563 = vmatpush3.bf16.msra.mxu0 (!%p170_p3), %v606_v0  ;;  %579 = vmatpush3.bf16.msra.mxu1 (!%p170_p3), %v606_v0 }
   0x9   : > { %564 = vmatprep.subr.bf16.mxu0 (!%p170_p3), %v607_v1  ;;  %577 = vmatprep.subr.bf16.mxu1 (!%p170_p3), %v607_v1 }
   0xc   : > { %565 = vmatpush3.bf16.msra.mxu0 (!%p170_p3), %v607_v1  ;;  %580 = vmatpush3.bf16.msra.mxu1 (!%p170_p3), %v607_v1 }
   0xd   : > { %566 = vmatprep.subr.bf16.mxu0 (!%p170_p3), %v608_v2  ;;  %578 = vmatprep.subr.bf16.mxu1 (!%p170_p3), %v608_v2 }
   0xe   : > { %s726_s18 = smov (!%p204_p4, %s521_s18), 15 }
   0xf   : > { %s522_s23 = sshll.u32 %s726_s18, 2 }
  0x10   : > { %s207_s26 = scalar_lea.vmem %s717_s0, %s522_s23  ;;  %567 = vmatpush3.bf16.msra.mxu0 %v608_v2  ;;  %581 = vmatpush3.bf16.msra.mxu1 %v608_v2  ;;  %s223_s4 = scalar_lea.vmem %s720_s3, %s522_s23 }
  0x11   : > { %v609_v3 = vld [vmem:[%s207_s26] sm:$0xff]   ;;  %v610_v4 = vld [vmem:[%s207_s26 + $0x10] sm:$0xff]   ;;  %v611_v5 = vld [vmem:[%s207_s26 + $0x8] sm:$0xff]  }
  0x12   : > { %568 = vmatprep.mubr.msk.bf16.mxu0 %vm285_vm0, %v609_v3  ;;  %572 = vmatprep.mubr.msk.bf16.mxu1 %vm285_vm0, %v610_v4  ;;  %v612_v6 = vld [vmem:[%s207_s26 + $0x18] sm:$0xff]  }
  0x13   : > { %569 = vmatmul.mubr.msk.bf16.vlgmr.msra.gmra.mrb[0].mxu0 %vm285_vm0, %v611_v5  ;;  %573 = vmatmul.mubr.msk.bf16.vlgmr.msra.gmra.mrb[0].mxu1 %vm285_vm0, %v612_v6 }
  0xe6   : > { %v570_v8 = vpop.f32.mrb[0].mxu0  ;;  %v574_v9 = vpop.f32.mrb[0].mxu1 }
  0xe7   : > { %v341_v10 = vadd.f32 %v570_v8, %v525_v7  ;;  %v357_v11 = vadd.f32 %v574_v9, %v525_v7  ;;  %v332_v12 = vpop.f32.mrb[1].mxu0  ;;  %v348_v13 = vpop.f32.mrb[1].mxu1 }
  0xe8   : > { %v333_v14 = vadd.f32 %v525_v7, %v332_v12  ;;  %v349_v15 = vadd.f32 %v525_v7, %v348_v13  ;;  %v571_v16 = vpop.f32.mrb[2].mxu0  ;;  %v575_v17 = vpop.f32.mrb[2].mxu1 }
  0xe9   : > { %v365_v18 = vmax.f32 %v341_v10, 0.0  ;;  %v369_v19 = vmax.f32 %v357_v11, 0.0  ;;  %v344_v20 = vadd.f32 %v571_v16, %v525_v7  ;;  %v360_v21 = vadd.f32 %v575_v17, %v525_v7  ;;  %v335_v22 = vpop.f32.mrb[3].mxu0  ;;  %v351_v23 = vpop.f32.mrb[3].mxu1 }
  0xea   : > { %v363_v24 = vmax.f32 %v333_v14, 0.0  ;;  %v367_v25 = vmax.f32 %v349_v15, 0.0  ;;  %v336_v26 = vadd.f32 %v525_v7, %v335_v22  ;;  %v352_v27 = vadd.f32 %v525_v7, %v351_v23 }
  0xeb   : > { %v549_v28 = vpack.c.bf16 %v365_v18, %v365_v18  ;;  %v553_v29 = vpack.c.bf16 %v369_v19, %v369_v19  ;;  %v366_v30 = vmax.f32 %v344_v20, 0.0  ;;  %v370_v31 = vmax.f32 %v360_v21, 0.0 }
  0xec   : > { %v547_v32 = vpack.c.bf16 %v363_v24, %v363_v24  ;;  %v551_v33 = vpack.c.bf16 %v367_v25, %v367_v25  ;;  %v364_v34 = vmax.f32 %v336_v26, 0.0  ;;  %v368_v35 = vmax.f32 %v352_v27, 0.0 }
  0xed   : > { %406 = vst.msk [vmem:[%s223_s4 + $0x8] sm:$0xf] %vm403_vm1, %v549_v28  ;;  %410 = vst.msk [vmem:[%s223_s4 + $0x18] sm:$0xf] %vm403_vm1, %v553_v29  ;;  %v550_v36 = vpack.c.bf16 %v366_v30, %v366_v30  ;;  %v554_v37 = vpack.c.bf16 %v370_v31, %v370_v31 }
  0xee   : > { %404 = vst.msk [vmem:[%s223_s4] sm:$0xf] %vm403_vm1, %v547_v32  ;;  %408 = vst.msk [vmem:[%s223_s4 + $0x10] sm:$0xf] %vm403_vm1, %v551_v33  ;;  %v548_v38 = vpack.c.bf16 %v364_v34, %v364_v34  ;;  %v552_v39 = vpack.c.bf16 %v368_v35, %v368_v35 }
  0xef   : > { %407 = vst.msk [vmem:[%s223_s4 + $0xc] sm:$0xf] %vm403_vm1, %v550_v36  ;;  %411 = vst.msk [vmem:[%s223_s4 + $0x1c] sm:$0xf] %vm403_vm1, %v554_v37 }
  0xf0   : > { %405 = vst.msk [vmem:[%s223_s4 + $0x4] sm:$0xf] %vm403_vm1, %v548_v38  ;;  %409 = vst.msk [vmem:[%s223_s4 + $0x14] sm:$0xf] %vm403_vm1, %v552_v39 }
  0xf1 PF: > { %s13_s14 = sadd.s32 1, %s635_s14   ;;  %s721_s12 = smov %s631_s13 }
  0xf2   : > { %p10_p5 = scmp.ge.s32.totalorder %s13_s14, 4   ;;  %s722_s13 = smov %s724_s15 }
  0xf4   :  { %12 = sbr.rel (!%p10_p5) target bundleno = 2 (0x2), region = 68 }

// kernel: rqvae_forward.7
= control target key start
LH: loop header
LB: loop body
LE: loop exit
PB: predicated region body
PF: predicated region fallthrough
CT: control target
= control target key end

     0   :  { %s1391_s12 = smov 0   ;;  %s1393_s13 = smov 0   ;;  %s1636_s0 = inlined_call_operand.vmem [shape: bf16[32,1024], index: 0, kind: input, shape index: {}]   ;;  %s1637_s1 = inlined_call_operand.vmem [shape: bf16[1024,128], index: 1, kind: input, shape index: {}]   ;;  %s1638_s2 = inlined_call_operand.vmem [shape: f32[1,128], index: 2, kind: input, shape index: {}]   ;;  %s1639_s3 = inlined_call_operand.vmem [shape: bf16[32,128], index: 3, kind: output, shape index: {}]  }
   0x1   :  { %s1395_s14 = smov 0  }
   0x2 LB: > { %s25_s15 = sadd.s32 1, %s1365_s13  ;;  %p1080_p0 = scmp.ge.s32.totalorder %s1369_s14, 1  ;;  %s1369_s14 = sphi %s1395_s14, %s13_s14   ;;  %s1365_s13 = sphi %s1393_s13, %s1641_s13   ;;  %s1361_s12 = sphi %s1391_s12, %s1640_s12  }
   0x3   : > { %p27_p1 = scmp.ge.s32.totalorder %s25_s15, 2  ;;  %p170_p2 = scmp.lt.s32.totalorder %s1369_s14, 3 }
   0x5   : > { %s1643_s15 = smov (%p27_p1, %s25_s15), 0  ;;  %p171_p3 = pnand %p1080_p0, %p170_p2 }
   0x6   : > { %v1283_v0 = vld [vmem:[%s1637_s1 + $0x40] sm:$0xff] (!%p171_p3)   ;;  %v1287_v4 = vld [vmem:[%s1637_s1 + $0x48] sm:$0xff] (!%p171_p3)   ;;  %v1291_v8 = vld [vmem:[%s1637_s1 + $0x50] sm:$0xff] (!%p171_p3)   ;;  %s1081_s25 = sshll.u32 (!%p171_p3), %s1361_s12, 1 }
   0x7   : > { %174 = sbr.rel (%p171_p3) target bundleno = 298 (0x12a), region = 32  ;;  %v1284_v1 = vld [vmem:[%s1637_s1 + $0xc0] sm:$0xff] (!%p171_p3)   ;;  %1171 = vmatprep.subr.bf16.mxu0 (!%p171_p3), %v1283_v0  ;;  %v1288_v5 = vld [vmem:[%s1637_s1 + $0xc8] sm:$0xff] (!%p171_p3)   ;;  %v1292_v9 = vld [vmem:[%s1637_s1 + $0xd0] sm:$0xff] (!%p171_p3)   ;;  %p206_p4 = scmp.lt.s32.totalorder (!%p171_p3), %s1081_s25, 3 }
   0x8   : > { %v1285_v2 = vld [vmem:[%s1637_s1] sm:$0xff] (!%p171_p3)   ;;  %1193 = vmatprep.subr.bf16.mxu1 (!%p171_p3), %v1284_v1  ;;  %v1289_v6 = vld [vmem:[%s1637_s1 + $0x8] sm:$0xff] (!%p171_p3)   ;;  %v1293_v10 = vld [vmem:[%s1637_s1 + $0x10] sm:$0xff] (!%p171_p3)  }
   0x9   : > { %v1286_v3 = vld [vmem:[%s1637_s1 + $0x80] sm:$0xff] (!%p171_p3)   ;;  %1172 = vmatpush3.bf16.msra.mxu0 (!%p171_p3), %v1285_v2  ;;  %v1290_v7 = vld [vmem:[%s1637_s1 + $0x88] sm:$0xff] (!%p171_p3)   ;;  %v1294_v11 = vld [vmem:[%s1637_s1 + $0x90] sm:$0xff] (!%p171_p3)  }
   0xa   : > { %1194 = vmatpush3.bf16.msra.mxu1 (!%p171_p3), %v1286_v3  ;;  %1173 = vmatprep.subr.bf16.mxu0 (!%p171_p3), %v1287_v4  ;;  %v1295_v12 = vld [vmem:[%s1637_s1 + $0x58] sm:$0xff] (!%p171_p3)   ;;  %v1299_v16 = vld [vmem:[%s1637_s1 + $0x60] sm:$0xff] (!%p171_p3)   ;;  %v1303_v20 = vld [vmem:[%s1637_s1 + $0x68] sm:$0xff] (!%p171_p3)  }
   0xb   : > { %1195 = vmatprep.subr.bf16.mxu1 (!%p171_p3), %v1288_v5  ;;  %v1296_v13 = vld [vmem:[%s1637_s1 + $0xd8] sm:$0xff] (!%p171_p3)   ;;  %v1300_v17 = vld [vmem:[%s1637_s1 + $0xe0] sm:$0xff] (!%p171_p3)   ;;  %v1304_v21 = vld [vmem:[%s1637_s1 + $0xe8] sm:$0xff] (!%p171_p3)  }
   0xc   : > { %v1297_v14 = vld [vmem:[%s1637_s1 + $0x18] sm:$0xff] (!%p171_p3)   ;;  %v1301_v18 = vld [vmem:[%s1637_s1 + $0x20] sm:$0xff] (!%p171_p3)   ;;  %v1305_v22 = vld [vmem:[%s1637_s1 + $0x28] sm:$0xff] (!%p171_p3)  }
   0xd   : > { %1174 = vmatpush3.bf16.msra.mxu0 (!%p171_p3), %v1289_v6  ;;  %v1298_v15 = vld [vmem:[%s1637_s1 + $0x98] sm:$0xff] (!%p171_p3)   ;;  %v1302_v19 = vld [vmem:[%s1637_s1 + $0xa0] sm:$0xff] (!%p171_p3)   ;;  %v1306_v23 = vld [vmem:[%s1637_s1 + $0xa8] sm:$0xff] (!%p171_p3)  }
   0xe   : > { %1196 = vmatpush3.bf16.msra.mxu1 %v1290_v7  ;;  %1175 = vmatprep.subr.bf16.mxu0 %v1291_v8  ;;  %s1645_s25 = smov (!%p206_p4, %s1081_s25), 3  ;;  %v1307_v24 = vld [vmem:[%s1637_s1 + $0x70] sm:$0xff]   ;;  %v1311_v28 = vld [vmem:[%s1637_s1 + $0x78] sm:$0xff]   ;;  %v1315_v40 = vld [vmem:[%s1637_s1 + $0x140] sm:$0xff]  }
   0xf   : > { %1197 = vmatprep.subr.bf16.mxu1 %v1292_v9  ;;  %v1308_v25 = vld [vmem:[%s1637_s1 + $0xf0] sm:$0xff]   ;;  %s1163_s24 = sshll.u32 %s1645_s25, 5  ;;  %v1312_v29 = vld [vmem:[%s1637_s1 + $0xf8] sm:$0xff]   ;;  %v1316_v41 = vld [vmem:[%s1637_s1 + $0x1c0] sm:$0xff]  }
  0x10   : > { %v1309_v26 = vld [vmem:[%s1637_s1 + $0x30] sm:$0xff]   ;;  %s1508_s12 = scalar_lea.vmem %s1636_s0, %s1163_s24  ;;  %v1313_v30 = vld [vmem:[%s1637_s1 + $0x38] sm:$0xff]   ;;  %v1317_v42 = vld [vmem:[%s1637_s1 + $0x100] sm:$0xff]  }
  0x11   : > { %1176 = vmatpush3.bf16.msra.mxu0 %v1293_v10  ;;  %v1310_v27 = vld [vmem:[%s1637_s1 + $0xb0] sm:$0xff]   ;;  %v1314_v31 = vld [vmem:[%s1637_s1 + $0xb8] sm:$0xff]   ;;  %v229_v32 = vld [vmem:[%s1508_s12] sm:$0xff] }
  0x12   : > { %1198 = vmatpush3.bf16.msra.mxu1 %v1294_v11  ;;  %1177 = vmatprep.subr.bf16.mxu0 %v1295_v12  ;;  %v233_v33 = vld [vmem:[%s1508_s12 + $0x20] sm:$0xff]  ;;  %v230_v34 = vld [vmem:[%s1508_s12 + $0x8] sm:$0xff]  ;;  %v1323_v48 = vld [vmem:[%s1637_s1 + $0x150] sm:$0xff]  }
  0x13   : > { %1199 = vmatprep.subr.bf16.mxu1 %v1296_v13  ;;  %v1087_v35 = vcombine.low %v229_v32, %v233_v33  ;;  %v1088_v36 = vcombine.high %v229_v32, %v233_v33  ;;  %v234_v37 = vld [vmem:[%s1508_s12 + $0x28] sm:$0xff]  ;;  %v1318_v43 = vld [vmem:[%s1637_s1 + $0x180] sm:$0xff]   ;;  %v1324_v49 = vld [vmem:[%s1637_s1 + $0x1d0] sm:$0xff]  }
  0x14   : > { %v1089_v38 = vcombine.low %v230_v34, %v234_v37  ;;  %v1090_v39 = vcombine.high %v230_v34, %v234_v37  ;;  %v1319_v44 = vld [vmem:[%s1637_s1 + $0x148] sm:$0xff]   ;;  %v1325_v50 = vld [vmem:[%s1637_s1 + $0x110] sm:$0xff]   ;;  %v1327_v52 = vld [vmem:[%s1637_s1 + $0x158] sm:$0xff]  }
  0x15   : > { %1178 = vmatpush3.bf16.msra.mxu0 %v1297_v14  ;;  %828 = vmatprep.mubr.bf16.mxu0 %v1088_v36  ;;  %v1320_v45 = vld [vmem:[%s1637_s1 + $0x1c8] sm:$0xff]   ;;  %v1326_v51 = vld [vmem:[%s1637_s1 + $0x190] sm:$0xff]   ;;  %v1328_v53 = vld [vmem:[%s1637_s1 + $0x1d8] sm:$0xff]  }
  0x16   : > { %1200 = vmatpush3.bf16.msra.mxu1 %v1298_v15  ;;  %1179 = vmatprep.subr.bf16.mxu0 %v1299_v16  ;;  %v1321_v46 = vld [vmem:[%s1637_s1 + $0x108] sm:$0xff]   ;;  %v1329_v54 = vld [vmem:[%s1637_s1 + $0x118] sm:$0xff]   ;;  %v1331_v56 = vld [vmem:[%s1637_s1 + $0x160] sm:$0xff]  }
  0x17   : > { %1201 = vmatprep.subr.bf16.mxu1 %v1300_v17  ;;  %869 = vmatprep.mubr.bf16.mxu1 %v1090_v39  ;;  %v1322_v47 = vld [vmem:[%s1637_s1 + $0x188] sm:$0xff]   ;;  %v1330_v55 = vld [vmem:[%s1637_s1 + $0x198] sm:$0xff]   ;;  %v1332_v57 = vld [vmem:[%s1637_s1 + $0x1e0] sm:$0xff]  }
  0x18   : > { %v1333_v58 = vld [vmem:[%s1637_s1 + $0x120] sm:$0xff]   ;;  %v1335_v60 = vld [vmem:[%s1637_s1 + $0x168] sm:$0xff]   ;;  %v1339_v0 = vld [vmem:[%s1637_s1 + $0x170] sm:$0xff]  }
  0x19   : > { %1180 = vmatpush3.bf16.msra.mxu0 %v1301_v18  ;;  %v1334_v59 = vld [vmem:[%s1637_s1 + $0x1a0] sm:$0xff]   ;;  %v1336_v61 = vld [vmem:[%s1637_s1 + $0x1e8] sm:$0xff]   ;;  %v1340_v1 = vld [vmem:[%s1637_s1 + $0x1f0] sm:$0xff]  }
  0x1a   : > { %1202 = vmatpush3.bf16.msra.mxu1 %v1302_v19  ;;  %1181 = vmatprep.subr.bf16.mxu0 %v1303_v20  ;;  %v1337_v62 = vld [vmem:[%s1637_s1 + $0x128] sm:$0xff]   ;;  %v1341_v2 = vld [vmem:[%s1637_s1 + $0x130] sm:$0xff]   ;;  %v1343_v4 = vld [vmem:[%s1637_s1 + $0x178] sm:$0xff]  }
  0x1b   : > { %1203 = vmatprep.subr.bf16.mxu1 %v1304_v21  ;;  %v1338_v63 = vld [vmem:[%s1637_s1 + $0x1a8] sm:$0xff]   ;;  %v1342_v3 = vld [vmem:[%s1637_s1 + $0x1b0] sm:$0xff]   ;;  %v1344_v5 = vld [vmem:[%s1637_s1 + $0x1f8] sm:$0xff]  }
  0x1c   : > { %v1345_v6 = vld [vmem:[%s1637_s1 + $0x138] sm:$0xff]   ;;  %v231_v8 = vld [vmem:[%s1508_s12 + $0x10] sm:$0xff]  ;;  %v1086_v18 = vld [vmem:[%s1638_s2] ss:$0 sm:$0xff] }
  0x1d   : > { %1182 = vmatpush3.bf16.msra.mxu0 %v1305_v22  ;;  %v1346_v7 = vld [vmem:[%s1637_s1 + $0x1b8] sm:$0xff]   ;;  %v235_v9 = vld [vmem:[%s1508_s12 + $0x30] sm:$0xff] }
  0x1e   : > { %1204 = vmatpush3.bf16.msra.mxu1 %v1306_v23  ;;  %1183 = vmatprep.subr.bf16.mxu0 %v1307_v24  ;;  %v1091_v10 = vcombine.low %v231_v8, %v235_v9  ;;  %v1092_v11 = vcombine.high %v231_v8, %v235_v9  ;;  %v232_v12 = vld [vmem:[%s1508_s12 + $0x18] sm:$0xff] }
  0x1f   : > { %1205 = vmatprep.subr.bf16.mxu1 %v1308_v25  ;;  %v236_v13 = vld [vmem:[%s1508_s12 + $0x38] sm:$0xff]  ;;  %s1085_s12 = sshll.u32 %s1645_s25, 2 }
  0x20   : > { %v1093_v14 = vcombine.low %v232_v12, %v236_v13  ;;  %v1094_v15 = vcombine.high %v232_v12, %v236_v13  ;;  %s226_s17 = scalar_lea.vmem %s1639_s3, %s1085_s12 }
  0x21   : > { %1184 = vmatpush3.bf16.msra.mxu0 %v1309_v26 }
  0x22   : > { %1206 = vmatpush3.bf16.msra.mxu1 %v1310_v27  ;;  %1185 = vmatprep.subr.bf16.mxu0 %v1311_v28 }
  0x23   : > { %1207 = vmatprep.subr.bf16.mxu1 %v1312_v29 }
  0x25   : > { %1186 = vmatpush3.bf16.msra.mxu0 %v1313_v30 }
  0x26   : > { %1208 = vmatpush3.bf16.msra.mxu1 %v1314_v31  ;;  %1215 = vmatprep.subr.bf16.mxu0 %v1315_v40 }
  0x27   : > { %1237 = vmatprep.subr.bf16.mxu1 %v1316_v41 }
  0x28   : > { %829 = vmatmul.mubr.bf16.vlgmr.msra.gmra.mrb[0].mxu0 %v1087_v35 }
  0x29   : > { %870 = vmatmul.mubr.bf16.vlgmr.msra.gmra.mrb[0].mxu1 %v1089_v38  ;;  %1216 = vmatpush3.bf16.msra.mxu0 %v1317_v42 }
  0x2a   : > { %1238 = vmatpush3.bf16.msra.mxu1 %v1318_v43  ;;  %1217 = vmatprep.subr.bf16.mxu0 %v1319_v44 }
  0x2b   : > { %1239 = vmatprep.subr.bf16.mxu1 %v1320_v45  ;;  %910 = vmatprep.mubr.bf16.mxu0 %v1092_v11 }
  0x2c   : > { %951 = vmatprep.mubr.bf16.mxu1 %v1094_v15 }
  0x2d   : > { %1218 = vmatpush3.bf16.msra.mxu0 %v1321_v46 }
  0x2e   : > { %1240 = vmatpush3.bf16.msra.mxu1 %v1322_v47  ;;  %1219 = vmatprep.subr.bf16.mxu0 %v1323_v48 }
  0x2f   : > { %1241 = vmatprep.subr.bf16.mxu1 %v1324_v49 }
  0x31   : > { %1220 = vmatpush3.bf16.msra.mxu0 %v1325_v50 }
  0x32   : > { %1242 = vmatpush3.bf16.msra.mxu1 %v1326_v51  ;;  %1221 = vmatprep.subr.bf16.mxu0 %v1327_v52 }
  0x33   : > { %1243 = vmatprep.subr.bf16.mxu1 %v1328_v53 }
  0x35   : > { %1222 = vmatpush3.bf16.msra.mxu0 %v1329_v54 }
  0x36   : > { %1244 = vmatpush3.bf16.msra.mxu1 %v1330_v55  ;;  %1223 = vmatprep.subr.bf16.mxu0 %v1331_v56 }
  0x37   : > { %1245 = vmatprep.subr.bf16.mxu1 %v1332_v57 }
  0x39   : > { %1224 = vmatpush3.bf16.msra.mxu0 %v1333_v58 }
  0x3a   : > { %1246 = vmatpush3.bf16.msra.mxu1 %v1334_v59  ;;  %1225 = vmatprep.subr.bf16.mxu0 %v1335_v60 }
  0x3b   : > { %1247 = vmatprep.subr.bf16.mxu1 %v1336_v61 }
  0x3d   : > { %1226 = vmatpush3.bf16.msra.mxu0 %v1337_v62 }
  0x3e   : > { %1248 = vmatpush3.bf16.msra.mxu1 %v1338_v63  ;;  %1227 = vmatprep.subr.bf16.mxu0 %v1339_v0 }
  0x3f   : > { %1249 = vmatprep.subr.bf16.mxu1 %v1340_v1 }
  0x41   : > { %1228 = vmatpush3.bf16.msra.mxu0 %v1341_v2 }
  0x42   : > { %1250 = vmatpush3.bf16.msra.mxu1 %v1342_v3  ;;  %1229 = vmatprep.subr.bf16.mxu0 %v1343_v4 }
  0x43   : > { %1251 = vmatprep.subr.bf16.mxu1 %v1344_v5 }
  0x45   : > { %1230 = vmatpush3.bf16.msra.mxu0 %v1345_v6 }
  0x46   : > { %1252 = vmatpush3.bf16.msra.mxu1 %v1346_v7 }
  0x48   : > { %911 = vmatmul.mubr.bf16.vlgmr.msra.gmra.mrb[4].mxu0 %v1091_v10 }
  0x49   : > { %952 = vmatmul.mubr.bf16.vlgmr.msra.gmra.mrb[4].mxu1 %v1093_v14 }
  0xfb   : > { %v1187_v16 = vpop.f32.mrb[0].mxu0 }
  0xfc   : > { %v1209_v17 = vpop.f32.mrb[0].mxu1  ;;  %v1188_v19 = vpop.f32.mrb[1].mxu0 }
  0xfd   : > { %v1189_v20 = vadd.f32 %v1188_v19, %v1187_v16  ;;  %v1210_v21 = vpop.f32.mrb[1].mxu1  ;;  %v1190_v22 = vpop.f32.mrb[2].mxu0 }
  0xfe   : > { %v1211_v23 = vadd.f32 %v1210_v21, %v1209_v17  ;;  %v1212_v24 = vpop.f32.mrb[2].mxu1  ;;  %v1191_v25 = vpop.f32.mrb[3].mxu0 }
  0xff   : > { %v831_v26 = vadd.f32 %v1189_v20, %v1086_v18  ;;  %v1192_v27 = vadd.f32 %v1191_v25, %v1190_v22  ;;  %v1213_v28 = vpop.f32.mrb[3].mxu1 }
 0x100   : > { %v1214_v29 = vadd.f32 %v1213_v28, %v1212_v24 }
 0x101   : > { %v872_v30 = vadd.f32 %v1211_v23, %v831_v26  ;;  %v834_v31 = vadd.f32 %v1192_v27, %v1086_v18 }
 0x103   : > { %v875_v32 = vadd.f32 %v1214_v29, %v834_v31 }
 0x11b   : > { %v1231_v33 = vpop.f32.mrb[4].mxu0 }
 0x11c   : > { %v1253_v34 = vpop.f32.mrb[4].mxu1  ;;  %v1232_v35 = vpop.f32.mrb[5].mxu0 }
 0x11d   : > { %v1233_v36 = vadd.f32 %v1232_v35, %v1231_v33  ;;  %v1254_v37 = vpop.f32.mrb[5].mxu1  ;;  %v1234_v38 = vpop.f32.mrb[6].mxu0 }
 0x11e   : > { %v1255_v39 = vadd.f32 %v1254_v37, %v1253_v34  ;;  %v1256_v40 = vpop.f32.mrb[6].mxu1  ;;  %v1235_v41 = vpop.f32.mrb[7].mxu0 }
 0x11f   : > { %v913_v42 = vadd.f32 %v1233_v36, %v872_v30  ;;  %v1236_v43 = vadd.f32 %v1235_v41, %v1234_v38  ;;  %v1257_v44 = vpop.f32.mrb[7].mxu1 }
 0x120   : > { %v1258_v45 = vadd.f32 %v1257_v44, %v1256_v40 }
 0x121   : > { %v954_v46 = vadd.f32 %v1255_v39, %v913_v42  ;;  %v916_v47 = vadd.f32 %v1236_v43, %v875_v32 }
 0x123   : > { %v957_v48 = vadd.f32 %v1258_v45, %v916_v47  ;;  %v960_v49 = vmax.f32 %v954_v46, 0.0 }
 0x125   : > { %v961_v50 = vmax.f32 %v957_v48, 0.0 }
 0x127   : > { %v1169_v51 = vpack.c.bf16 %v961_v50, %v960_v49 }
 0x129   : > { %1170 = vst [vmem:[%s226_s17] sm:$0xff] %v1169_v51  }
 0x12a PF: > { %s13_s14 = sadd.s32 1, %s1369_s14   ;;  %s1640_s12 = smov %s1365_s13 }
 0x12b   : > { %p10_p5 = scmp.ge.s32.totalorder %s13_s14, 4   ;;  %s1641_s13 = smov %s1643_s15 }
 0x12d   :  { %12 = sbr.rel (!%p10_p5) target bundleno = 2 (0x2), region = 68 }

// kernel: rqvae_forward.9
= control target key start
LH: loop header
LB: loop body
LE: loop exit
PB: predicated region body
PF: predicated region fallthrough
CT: control target
= control target key end

     0   :  { %s733_s12 = smov 0   ;;  %s735_s13 = smov 0   ;;  %s816_s0 = inlined_call_operand.vmem [shape: bf16[16,80], index: 0, kind: input, shape index: {}]   ;;  %s817_s1 = inlined_call_operand.vmem [shape: bf16[80,512], index: 1, kind: input, shape index: {}]   ;;  %s818_s2 = inlined_call_operand.vmem [shape: f32[1,512], index: 2, kind: input, shape index: {}]   ;;  %s819_s3 = inlined_call_operand.vmem [shape: bf16[16,512], index: 3, kind: output, shape index: {}]  }
   0x1   :  { %s737_s14 = smov 0   ;;  %s739_s15 = smov 0  }
   0x2   :  { %s741_s16 = smov 0  }
   0x3 LB: > { %s22_s17 = sadd.s32 1, %s706_s15  ;;  %s580_s18 = sadd.s32 4294967295, %s710_s16   ;;  %s710_s16 = sphi %s741_s16, %s13_s16   ;;  %s706_s15 = sphi %s739_s15, %s824_s15   ;;  %s702_s14 = sphi %s737_s14, %s823_s14   ;;  %s698_s13 = sphi %s735_s13, %s822_s13   ;;  %s694_s12 = sphi %s733_s12, %s821_s12  }
   0x4   : > { %p23_p0 = scmp.ge.s32.totalorder %s22_s17, 2  ;;  %p65_p1 = scmp.ne.s32.totalorder %s698_s13, %s694_s12 }
   0x5   : > { %p66_p2 = scmp.eq.s32.totalorder %s710_s16, 0  ;;  %p123_p4 = scmp.eq.s32.totalorder %s580_s18, 1 }
   0x6   : > { %s826_s17 = smov (%p23_p0, %s22_s17), 0  ;;  %s58_s20 = sadd.s32 1, %s698_s13 }
   0x7   : > { %p67_p3 = por %p66_p2, %p65_p1  ;;  %s55_s19 = ssub.s32 %s706_s15, %s826_s17 }
   0x8   : > { %p56_p5 = scmp.eq.s32.totalorder %s55_s19, 0  ;;  %p768_p6 = por %p123_p4, %p65_p1 }
   0x9   : > { %p584_p7 = scmp.ge.s32.totalorder %s710_s16, 2 }
   0xa   : > { %s773_s22 = scalar_select %p56_p5, %s698_s13, %s58_s20  }
   0xb   : > { %154 = sbr.rel (%p584_p7) target bundleno = 27 (0x1b), region = 20 }
  0x12   : > { %157 = sbr.rel (!%p67_p3) target bundleno = 27 (0x1b), region = 24  ;;  %s159_s23 = sand.u32 (%p67_p3), 1, %s698_s13  }
  0x13   : > { %s609_s24 = sshll.u32 (%p67_p3), %s706_s15, 3  ;;  %s613_s25 = smul.u32 (%p67_p3), 80, %s159_s23 }
  0x14   : > { %s164_s28 = scalar_lea.vmem (%p67_p3), %s817_s1, %s609_s24 }
  0x15   : > { %v210_v0 = vld [vmem:[%s164_s28] sm:$0xff] (%p67_p3)  ;;  %v212_v1 = vld [vmem:[%s164_s28 + $0x10] sm:$0xff] (%p67_p3)  ;;  %s161_s29 = scalar_lea.vmem (%p67_p3), [#allocation2], %s613_s25 }
  0x16   : > { %v214_v2 = vld [vmem:[%s164_s28 + $0x20] sm:$0xff] (%p67_p3)  ;;  %v216_v3 = vld [vmem:[%s164_s28 + $0x30] sm:$0xff] (%p67_p3)  ;;  %211 = vst [vmem:[%s161_s29] sm:$0xff] (%p67_p3), %v210_v0  ;;  %213 = vst [vmem:[%s161_s29 + $0x8] sm:$0xff] (%p67_p3), %v212_v1 }
  0x17   : > { %v218_v4 = vld [vmem:[%s164_s28 + $0x40] sm:$0xff] (%p67_p3)  ;;  %v220_v5 = vld [vmem:[%s164_s28 + $0x50] sm:$0xff] (%p67_p3)  ;;  %215 = vst [vmem:[%s161_s29 + $0x10] sm:$0xff] (%p67_p3), %v214_v2  ;;  %217 = vst [vmem:[%s161_s29 + $0x18] sm:$0xff] (%p67_p3), %v216_v3 }
  0x18   : > { %219 = vst [vmem:[%s161_s29 + $0x20] sm:$0xff] (%p67_p3), %v218_v4  ;;  %221 = vst [vmem:[%s161_s29 + $0x28] sm:$0xff] (%p67_p3), %v220_v5  ;;  %v222_v6 = vld [vmem:[%s164_s28 + $0x60] sm:$0xff] (%p67_p3)  ;;  %v224_v7 = vld [vmem:[%s164_s28 + $0x70] sm:$0xff] (%p67_p3) }
  0x19   : > { %v226_v8 = vld [vmem:[%s164_s28 + $0x80] sm:$0xff]  ;;  %223 = vst [vmem:[%s161_s29 + $0x30] sm:$0xff] %v222_v6  ;;  %225 = vst [vmem:[%s161_s29 + $0x38] sm:$0xff] %v224_v7  ;;  %v228_v9 = vld [vmem:[%s164_s28 + $0x90] sm:$0xff] }
  0x1a   : > { %227 = vst [vmem:[%s161_s29 + $0x40] sm:$0xff] %v226_v8  ;;  %229 = vst [vmem:[%s161_s29 + $0x48] sm:$0xff] %v228_v9 }
  0x1b PF: > { %p587_p8 = scmp.ge.s32.totalorder %s710_s16, 1  ;;  %p242_p9 = scmp.lt.s32.totalorder %s710_s16, 3 }
  0x1d   : > { %p243_p10 = pnand %p587_p8, %p242_p9 }
  0x1e   : > { %s249_s30 = sand.u32 (!%p243_p10), 1, %s694_s12   ;;  %v712_v10 = vmov (!%p243_p10), 0   ;;  %v671_v21 = vld [vmem:[%s816_s0] sm:$0xff] (!%p243_p10)   ;;  %vm374_vm0 = vcmask (!%p243_p10), 654336   ;;  %s589_s8 = sshll.u32 (!%p243_p10), %s702_s14, 1  ;;  %v309_v22 = vlaneseq (!%p243_p10) }
  0x1f   : > { %246 = sbr.rel (%p243_p10) target bundleno = 286 (0x11e), region = 66  ;;  %410 = vmatprep.mubr.bf16.mxu0 (!%p243_p10), %v712_v10  ;;  %p288_p11 = scmp.lt.s32.totalorder (!%p243_p10), %s589_s8, 3 }
  0x20   : > { %s614_s4 = smul.u32 (!%p243_p10), 80, %s249_s30  ;;  %v310_v23 = vshrl.u32 (!%p243_p10), %v309_v22, 7  ;;  %s588_s18 = sshll.u32 (!%p243_p10), %s249_s30, 4 }
  0x21   : > { %s279_s19 = scalar_lea.vmem (!%p243_p10), [#allocation3], %s588_s18 }
  0x22   : > { %s251_s5 = scalar_lea.vmem (!%p243_p10), [#allocation2], %s614_s4  ;;  %v311_v24 = vsub.s32 (!%p243_p10), 0, %v310_v23  ;;  %v315_v26 = vsub.s32 (!%p243_p10), 1, %v310_v23 }
  0x23   : > { %v656_v11 = vld [vmem:[%s251_s5 + $0x4] ss:$8 sps:$4 sm:$0xff] (!%p243_p10)   ;;  %v658_v12 = vld [vmem:[%s251_s5] ss:$8 sps:$4 sm:$0xff] (!%p243_p10)   ;;  %v659_v13 = vld [vmem:[%s251_s5 + $0x14] ss:$8 sps:$4 sm:$0xff] (!%p243_p10)  }
  0x24   : > { %378 = vmatprep.subr.bf16.mxu0 (!%p243_p10), %v656_v11  ;;  %v661_v14 = vld [vmem:[%s251_s5 + $0x10] ss:$8 sps:$4 sm:$0xff] (!%p243_p10)   ;;  %v662_v15 = vld [vmem:[%s251_s5 + $0x24] ss:$8 sps:$4 sm:$0xff] (!%p243_p10)   ;;  %v664_v16 = vld [vmem:[%s251_s5 + $0x20] ss:$8 sps:$4 sm:$0xff] (!%p243_p10)  }
  0x25   : > { %379 = vmatpush1.bf16.msra.mxu0 (!%p243_p10), %v658_v12  ;;  %v665_v17 = vld [vmem:[%s251_s5 + $0x34] ss:$8 sps:$4 sm:$0xff] (!%p243_p10)   ;;  %v667_v18 = vld [vmem:[%s251_s5 + $0x30] ss:$8 sps:$4 sm:$0xff] (!%p243_p10)   ;;  %v668_v19 = vld [vmem:[%s251_s5 + $0x44] ss:$8 sps:$4 sm:$0xff] (!%p243_p10)  }
  0x26   : > { %380 = vmatprep.subr.bf16.mxu0 %v659_v13  ;;  %v670_v20 = vld [vmem:[%s251_s5 + $0x40] ss:$8 sps:$4 sm:$0xff]   ;;  %s828_s8 = smov (!%p288_p11, %s589_s8), 3  ;;  %s612_s12 = sshll.u32 (%p768_p6), %s702_s14, 3 }
  0x27   : > { %s290_s11 = scalar_lea.vmem %s818_s2, %s828_s8  ;;  %s451_s24 = scalar_lea.vmem (%p768_p6), %s819_s3, %s612_s12 }
  0x28   : > { %v307_v25 = vld [vmem:[%s290_s11] sm:$0x3] }
  0x29   : > { %381 = vmatpush1.bf16.msra.mxu0 %v661_v14  ;;  %v312_v27 = vrot.slane %v307_v25, %v311_v24  ;;  %v316_v28 = vrot.slane %v307_v25, %v315_v26 }
  0x2a   : > { %382 = vmatprep.subr.bf16.mxu0 %v662_v15 }
  0x2d   : > { %383 = vmatpush1.bf16.msra.mxu0 %v664_v16 }
  0x2e   : > { %384 = vmatprep.subr.bf16.mxu0 %v665_v17 }
  0x31   : > { %385 = vmatpush1.bf16.msra.mxu0 %v667_v18 }
  0x32   : > { %386 = vmatprep.subr.bf16.mxu0 %v668_v19 }
  0x35   : > { %387 = vmatpush1.bf16.msra.mxu0 %v670_v20 }
  0x38   : > { %601 = vmatmul.mubr.msk.bf16.vlgmr.msra.gmra.mrb[0].mxu0 %vm374_vm0, %v671_v21 }
 0x10b   : > { %v412_v29 = vpop.f32.mrb[0].mxu0 }
 0x10c   : > { %v413_v30 = vadd.f32 %v412_v29, %v312_v27  ;;  %v414_v31 = vpop.f32.mrb[1].mxu0 }
 0x10d   : > { %v415_v32 = vadd.f32 %v414_v31, %v316_v28  ;;  %v416_v33 = vpop.f32.mrb[2].mxu0 }
 0x10e   : > { %v421_v34 = vmax.f32 %v413_v30, 0.0  ;;  %v417_v35 = vadd.f32 %v416_v33, %v312_v27  ;;  %v418_v36 = vpop.f32.mrb[3].mxu0 }
 0x10f   : > { %v422_v37 = vmax.f32 %v415_v32, 0.0  ;;  %v419_v38 = vadd.f32 %v418_v36, %v316_v28  ;;  %445 = sbr.rel (!%p768_p6) target bundleno = 286 (0x11e), region = 74 }
 0x110   : > { %v423_v39 = vmax.f32 %v417_v35, 0.0 }
 0x111   : > { %v610_v40 = vpack.c.bf16 %v422_v37, %v421_v34  ;;  %v424_v41 = vmax.f32 %v419_v38, 0.0 }
 0x113   : > { %437 = vst [vmem:[%s279_s19] sm:$0xff] %v610_v40  ;;  %v611_v42 = vpack.c.bf16 %v424_v41, %v423_v39 }
 0x115   : > { %438 = vst [vmem:[%s279_s19 + $0x8] sm:$0xff] %v611_v42 }
 0x11a   : > { %v481_v43 = vld [vmem:[%s279_s19] sm:$0xff] }
 0x11b   : > { %482 = vst [vmem:[%s451_s24] sm:$0xff] %v481_v43 }
 0x11c   : > { %v483_v44 = vld [vmem:[%s279_s19 + $0x8] sm:$0xff] }
 0x11d   : > { %484 = vst [vmem:[%s451_s24 + $0x10] sm:$0xff] %v483_v44 }
 0x11e PF: > { %s13_s16 = sadd.s32 1, %s710_s16   ;;  %s821_s12 = smov %s698_s13 }
 0x11f   : > { %p10_p12 = scmp.ge.s32.totalorder %s13_s16, 4   ;;  %s822_s13 = smov %s773_s22 }
 0x120   : > { %s823_s14 = smov %s706_s15  ;;  %s824_s15 = smov %s826_s17 }
 0x121   :  { %12 = sbr.rel (!%p10_p12) target bundleno = 3 (0x3), region = 149 }

// kernel: rqvae_forward.8
= control target key start
LH: loop header
LB: loop body
LE: loop exit
PB: predicated region body
PF: predicated region fallthrough
CT: control target
= control target key end

     0   :  { %vm1475_vm0 = vcmask 64512   ;;  %vm1524_vm5 = vcmask 130048   ;;  %s2560_s1 = inlined_call_operand.vmem [shape: bf16[2048,8], index: 1, kind: input, shape index: {}]   ;;  %s2561_s0 = inlined_call_operand.vmem [shape: bf16[16,2048], index: 0, kind: input, shape index: {}]   ;;  %s2562_s2 = inlined_call_operand.vmem [shape: f32[1,8], index: 2, kind: input, shape index: {}]   ;;  %s2563_s3 = inlined_call_operand.vmem [shape: f32[16,8], index: 3, kind: input, shape index: {}]   ;;  %s2564_s4 = inlined_call_operand.vmem [shape: f32[16,8], index: 4, kind: output, shape index: {}]  }
   0x1   :  { %v1953_v0 = vld [vmem:[%s2560_s1 + $0x40] sm:$0xff]   ;;  %v1957_v4 = vld [vmem:[%s2560_s1 + $0x48] sm:$0xff]   ;;  %v1961_v8 = vld [vmem:[%s2560_s1 + $0x50] sm:$0xff]  }
   0x2   :  { %v1954_v1 = vld [vmem:[%s2560_s1 + $0xc0] sm:$0xff]   ;;  %1761 = vmatprep.subr.bf16.mxu0 %v1953_v0  ;;  %v1958_v5 = vld [vmem:[%s2560_s1 + $0xc8] sm:$0xff]   ;;  %v1962_v9 = vld [vmem:[%s2560_s1 + $0xd0] sm:$0xff]  }
   0x3   :  { %v1955_v2 = vld [vmem:[%s2560_s1] sm:$0xff]   ;;  %1783 = vmatprep.subr.bf16.mxu1 %v1954_v1  ;;  %v1959_v6 = vld [vmem:[%s2560_s1 + $0x8] sm:$0xff]   ;;  %v1963_v10 = vld [vmem:[%s2560_s1 + $0x10] sm:$0xff]  }
   0x4   :  { %v1956_v3 = vld [vmem:[%s2560_s1 + $0x80] sm:$0xff]   ;;  %1762 = vmatpush3.bf16.msra.mxu0 %v1955_v2  ;;  %v1960_v7 = vld [vmem:[%s2560_s1 + $0x88] sm:$0xff]   ;;  %v1964_v11 = vld [vmem:[%s2560_s1 + $0x90] sm:$0xff]  }
   0x5   :  { %1784 = vmatpush3.bf16.msra.mxu1 %v1956_v3  ;;  %1763 = vmatprep.subr.bf16.mxu0 %v1957_v4  ;;  %v1965_v12 = vld [vmem:[%s2560_s1 + $0x58] sm:$0xff]   ;;  %v1969_v16 = vld [vmem:[%s2560_s1 + $0x60] sm:$0xff]   ;;  %v1973_v20 = vld [vmem:[%s2560_s1 + $0x68] sm:$0xff]  }
   0x6   :  { %1785 = vmatprep.subr.bf16.mxu1 %v1958_v5  ;;  %v1966_v13 = vld [vmem:[%s2560_s1 + $0xd8] sm:$0xff]   ;;  %v1970_v17 = vld [vmem:[%s2560_s1 + $0xe0] sm:$0xff]   ;;  %v1974_v21 = vld [vmem:[%s2560_s1 + $0xe8] sm:$0xff]  }
   0x7   :  { %v1967_v14 = vld [vmem:[%s2560_s1 + $0x18] sm:$0xff]   ;;  %v1971_v18 = vld [vmem:[%s2560_s1 + $0x20] sm:$0xff]   ;;  %v1975_v22 = vld [vmem:[%s2560_s1 + $0x28] sm:$0xff]  }
   0x8   :  { %1764 = vmatpush3.bf16.msra.mxu0 %v1959_v6  ;;  %v1968_v15 = vld [vmem:[%s2560_s1 + $0x98] sm:$0xff]   ;;  %v1972_v19 = vld [vmem:[%s2560_s1 + $0xa0] sm:$0xff]   ;;  %v1976_v23 = vld [vmem:[%s2560_s1 + $0xa8] sm:$0xff]  }
   0x9   :  { %1786 = vmatpush3.bf16.msra.mxu1 %v1960_v7  ;;  %1765 = vmatprep.subr.bf16.mxu0 %v1961_v8  ;;  %v1977_v24 = vld [vmem:[%s2560_s1 + $0x70] sm:$0xff]   ;;  %v1981_v28 = vld [vmem:[%s2560_s1 + $0x78] sm:$0xff]   ;;  %v18_v32 = vld [vmem:[%s2561_s0] sm:$0xff] }
   0xa   :  { %1787 = vmatprep.subr.bf16.mxu1 %v1962_v9  ;;  %v1978_v25 = vld [vmem:[%s2560_s1 + $0xf0] sm:$0xff]   ;;  %v1982_v29 = vld [vmem:[%s2560_s1 + $0xf8] sm:$0xff]   ;;  %v26_v33 = vld [vmem:[%s2561_s0 + $0x40] sm:$0xff] }
   0xb   :  { %v1979_v26 = vld [vmem:[%s2560_s1 + $0x30] sm:$0xff]   ;;  %v1983_v30 = vld [vmem:[%s2560_s1 + $0x38] sm:$0xff]   ;;  %v19_v34 = vld [vmem:[%s2561_s0 + $0x8] sm:$0xff]  ;;  %v1613_v35 = vcombine.low %v18_v32, %v26_v33  ;;  %v1614_v36 = vcombine.high %v18_v32, %v26_v33 }
   0xc   :  { %1766 = vmatpush3.bf16.msra.mxu0 %v1963_v10  ;;  %v1980_v27 = vld [vmem:[%s2560_s1 + $0xb0] sm:$0xff]   ;;  %v1984_v31 = vld [vmem:[%s2560_s1 + $0xb8] sm:$0xff]   ;;  %v27_v37 = vld [vmem:[%s2561_s0 + $0x48] sm:$0xff] }
   0xd   :  { %1788 = vmatpush3.bf16.msra.mxu1 %v1964_v11  ;;  %1767 = vmatprep.subr.bf16.mxu0 %v1965_v12  ;;  %v1615_v38 = vcombine.low %v19_v34, %v27_v37  ;;  %v1616_v39 = vcombine.high %v19_v34, %v27_v37  ;;  %v1985_v40 = vld [vmem:[%s2560_s1 + $0x140] sm:$0xff]   ;;  %v1989_v44 = vld [vmem:[%s2560_s1 + $0x148] sm:$0xff]   ;;  %v1993_v48 = vld [vmem:[%s2560_s1 + $0x150] sm:$0xff]  }
   0xe   :  { %1789 = vmatprep.subr.bf16.mxu1 %v1966_v13  ;;  %1177 = vmatprep.mubr.bf16.mxu0 %v1614_v36  ;;  %v1986_v41 = vld [vmem:[%s2560_s1 + $0x1c0] sm:$0xff]   ;;  %v1990_v45 = vld [vmem:[%s2560_s1 + $0x1c8] sm:$0xff]   ;;  %v1994_v49 = vld [vmem:[%s2560_s1 + $0x1d0] sm:$0xff]  }
   0xf   :  { %1218 = vmatprep.mubr.bf16.mxu1 %v1616_v39  ;;  %v1987_v42 = vld [vmem:[%s2560_s1 + $0x100] sm:$0xff]   ;;  %v1991_v46 = vld [vmem:[%s2560_s1 + $0x108] sm:$0xff]   ;;  %v1995_v50 = vld [vmem:[%s2560_s1 + $0x110] sm:$0xff]  }
  0x10   :  { %1768 = vmatpush3.bf16.msra.mxu0 %v1967_v14  ;;  %v1988_v43 = vld [vmem:[%s2560_s1 + $0x180] sm:$0xff]   ;;  %v1992_v47 = vld [vmem:[%s2560_s1 + $0x188] sm:$0xff]   ;;  %v1996_v51 = vld [vmem:[%s2560_s1 + $0x190] sm:$0xff]  }
  0x11   :  { %1790 = vmatpush3.bf16.msra.mxu1 %v1968_v15  ;;  %1769 = vmatprep.subr.bf16.mxu0 %v1969_v16  ;;  %v1997_v52 = vld [vmem:[%s2560_s1 + $0x158] sm:$0xff]   ;;  %v2001_v56 = vld [vmem:[%s2560_s1 + $0x160] sm:$0xff]   ;;  %v2005_v60 = vld [vmem:[%s2560_s1 + $0x168] sm:$0xff]  }
  0x12   :  { %1791 = vmatprep.subr.bf16.mxu1 %v1970_v17  ;;  %v1998_v53 = vld [vmem:[%s2560_s1 + $0x1d8] sm:$0xff]   ;;  %v2002_v57 = vld [vmem:[%s2560_s1 + $0x1e0] sm:$0xff]   ;;  %v2006_v61 = vld [vmem:[%s2560_s1 + $0x1e8] sm:$0xff]  }
  0x13   :  { %v1999_v54 = vld [vmem:[%s2560_s1 + $0x118] sm:$0xff]   ;;  %v2003_v58 = vld [vmem:[%s2560_s1 + $0x120] sm:$0xff]   ;;  %v2007_v62 = vld [vmem:[%s2560_s1 + $0x128] sm:$0xff]  }
  0x14   :  { %1770 = vmatpush3.bf16.msra.mxu0 %v1971_v18  ;;  %v2000_v55 = vld [vmem:[%s2560_s1 + $0x198] sm:$0xff]   ;;  %v2004_v59 = vld [vmem:[%s2560_s1 + $0x1a0] sm:$0xff]   ;;  %v2008_v63 = vld [vmem:[%s2560_s1 + $0x1a8] sm:$0xff]  }
  0x15   :  { %1792 = vmatpush3.bf16.msra.mxu1 %v1972_v19  ;;  %1771 = vmatprep.subr.bf16.mxu0 %v1973_v20  ;;  %v2009_v0 = vld [vmem:[%s2560_s1 + $0x170] sm:$0xff]   ;;  %v2013_v4 = vld [vmem:[%s2560_s1 + $0x178] sm:$0xff]   ;;  %v2017_v16 = vld [vmem:[%s2560_s1 + $0x240] sm:$0xff]  }
  0x16   :  { %1793 = vmatprep.subr.bf16.mxu1 %v1974_v21  ;;  %v2010_v1 = vld [vmem:[%s2560_s1 + $0x1f0] sm:$0xff]   ;;  %v2014_v5 = vld [vmem:[%s2560_s1 + $0x1f8] sm:$0xff]   ;;  %v2018_v17 = vld [vmem:[%s2560_s1 + $0x2c0] sm:$0xff]  }
  0x17   :  { %v2011_v2 = vld [vmem:[%s2560_s1 + $0x130] sm:$0xff]   ;;  %v2015_v6 = vld [vmem:[%s2560_s1 + $0x138] sm:$0xff]   ;;  %v2019_v18 = vld [vmem:[%s2560_s1 + $0x200] sm:$0xff]  }
  0x18   :  { %1772 = vmatpush3.bf16.msra.mxu0 %v1975_v22  ;;  %v2012_v3 = vld [vmem:[%s2560_s1 + $0x1b0] sm:$0xff]   ;;  %v2016_v7 = vld [vmem:[%s2560_s1 + $0x1b8] sm:$0xff]   ;;  %v2020_v19 = vld [vmem:[%s2560_s1 + $0x280] sm:$0xff]  }
  0x19   :  { %1794 = vmatpush3.bf16.msra.mxu1 %v1976_v23  ;;  %1773 = vmatprep.subr.bf16.mxu0 %v1977_v24  ;;  %v20_v8 = vld [vmem:[%s2561_s0 + $0x10] sm:$0xff]  ;;  %v21_v12 = vld [vmem:[%s2561_s0 + $0x18] sm:$0xff]  ;;  %v2021_v20 = vld [vmem:[%s2560_s1 + $0x248] sm:$0xff]  }
  0x1a   :  { %1795 = vmatprep.subr.bf16.mxu1 %v1978_v25  ;;  %v28_v9 = vld [vmem:[%s2561_s0 + $0x50] sm:$0xff]  ;;  %v29_v13 = vld [vmem:[%s2561_s0 + $0x58] sm:$0xff]  ;;  %v2022_v21 = vld [vmem:[%s2560_s1 + $0x2c8] sm:$0xff]  }
  0x1b   :  { %v1617_v10 = vcombine.low %v20_v8, %v28_v9  ;;  %v1618_v11 = vcombine.high %v20_v8, %v28_v9  ;;  %v1619_v14 = vcombine.low %v21_v12, %v29_v13  ;;  %v1620_v15 = vcombine.high %v21_v12, %v29_v13  ;;  %v2023_v22 = vld [vmem:[%s2560_s1 + $0x208] sm:$0xff]   ;;  %v2025_v24 = vld [vmem:[%s2560_s1 + $0x250] sm:$0xff]   ;;  %v2033_v32 = vld [vmem:[%s2560_s1 + $0x260] sm:$0xff]  }
  0x1c   :  { %1774 = vmatpush3.bf16.msra.mxu0 %v1979_v26  ;;  %v2024_v23 = vld [vmem:[%s2560_s1 + $0x288] sm:$0xff]   ;;  %v2026_v25 = vld [vmem:[%s2560_s1 + $0x2d0] sm:$0xff]   ;;  %v2034_v33 = vld [vmem:[%s2560_s1 + $0x2e0] sm:$0xff]  }
  0x1d   :  { %1796 = vmatpush3.bf16.msra.mxu1 %v1980_v27  ;;  %1775 = vmatprep.subr.bf16.mxu0 %v1981_v28  ;;  %v2027_v26 = vld [vmem:[%s2560_s1 + $0x210] sm:$0xff]   ;;  %v2029_v28 = vld [vmem:[%s2560_s1 + $0x258] sm:$0xff]   ;;  %v2035_v34 = vld [vmem:[%s2560_s1 + $0x220] sm:$0xff]  }
  0x1e   :  { %1797 = vmatprep.subr.bf16.mxu1 %v1982_v29  ;;  %v2028_v27 = vld [vmem:[%s2560_s1 + $0x290] sm:$0xff]   ;;  %v2030_v29 = vld [vmem:[%s2560_s1 + $0x2d8] sm:$0xff]   ;;  %v2037_v36 = vld [vmem:[%s2560_s1 + $0x268] sm:$0xff]  }
  0x1f   :  { %v2038_v37 = vld [vmem:[%s2560_s1 + $0x2e8] sm:$0xff]   ;;  %v2065_v8 = vld [vmem:[%s2560_s1 + $0x360] sm:$0xff]  }
  0x20   :  { %1776 = vmatpush3.bf16.msra.mxu0 %v1983_v30  ;;  %v2031_v30 = vld [vmem:[%s2560_s1 + $0x218] sm:$0xff]   ;;  %v2040_v39 = vld [vmem:[%s2560_s1 + $0x2a8] sm:$0xff]   ;;  %v2066_v9 = vld [vmem:[%s2560_s1 + $0x3e0] sm:$0xff]  }
  0x21   :  { %1798 = vmatpush3.bf16.msra.mxu1 %v1984_v31  ;;  %1805 = vmatprep.subr.bf16.mxu0 %v1985_v40  ;;  %v2032_v31 = vld [vmem:[%s2560_s1 + $0x298] sm:$0xff]   ;;  %v2041_v40 = vld [vmem:[%s2560_s1 + $0x270] sm:$0xff]   ;;  %v2069_v12 = vld [vmem:[%s2560_s1 + $0x368] sm:$0xff]  }
  0x22   :  { %1827 = vmatprep.subr.bf16.mxu1 %v1986_v41  ;;  %v2042_v41 = vld [vmem:[%s2560_s1 + $0x2f0] sm:$0xff]   ;;  %v2070_v13 = vld [vmem:[%s2560_s1 + $0x3e8] sm:$0xff]  }
  0x23   :  { %1178 = vmatmul.mubr.bf16.vlgmr.msra.gmra.mrb[0].mxu0 %v1613_v35  ;;  %v2036_v35 = vld [vmem:[%s2560_s1 + $0x2a0] sm:$0xff]  }
  0x24   :  { %1219 = vmatmul.mubr.bf16.vlgmr.msra.gmra.mrb[0].mxu1 %v1615_v38  ;;  %1806 = vmatpush3.bf16.msra.mxu0 %v1987_v42  ;;  %v2039_v38 = vld [vmem:[%s2560_s1 + $0x228] sm:$0xff]   ;;  %v2043_v42 = vld [vmem:[%s2560_s1 + $0x230] sm:$0xff]  }
  0x25   :  { %1828 = vmatpush3.bf16.msra.mxu1 %v1988_v43  ;;  %1807 = vmatprep.subr.bf16.mxu0 %v1989_v44  ;;  %v2044_v43 = vld [vmem:[%s2560_s1 + $0x2b0] sm:$0xff]   ;;  %v2045_v44 = vld [vmem:[%s2560_s1 + $0x278] sm:$0xff]  }
  0x26   :  { %1829 = vmatprep.subr.bf16.mxu1 %v1990_v45  ;;  %1259 = vmatprep.mubr.bf16.mxu0 %v1618_v11  ;;  %v2046_v45 = vld [vmem:[%s2560_s1 + $0x2f8] sm:$0xff]   ;;  %v2068_v11 = vld [vmem:[%s2560_s1 + $0x3a0] sm:$0xff]  }
  0x27   :  { %1300 = vmatprep.mubr.bf16.mxu1 %v1620_v15  ;;  %v2072_v15 = vld [vmem:[%s2560_s1 + $0x3a8] sm:$0xff]  }
  0x28   :  { %1808 = vmatpush3.bf16.msra.mxu0 %v1991_v46  ;;  %v2047_v46 = vld [vmem:[%s2560_s1 + $0x238] sm:$0xff]  }
  0x29   :  { %1830 = vmatpush3.bf16.msra.mxu1 %v1992_v47  ;;  %1809 = vmatprep.subr.bf16.mxu0 %v1993_v48  ;;  %v2048_v47 = vld [vmem:[%s2560_s1 + $0x2b8] sm:$0xff]   ;;  %v22_v48 = vld [vmem:[%s2561_s0 + $0x20] sm:$0xff] }
  0x2a   :  { %1831 = vmatprep.subr.bf16.mxu1 %v1994_v49  ;;  %v30_v49 = vld [vmem:[%s2561_s0 + $0x60] sm:$0xff] }
  0x2c   :  { %1810 = vmatpush3.bf16.msra.mxu0 %v1995_v50  ;;  %v23_v50 = vld [vmem:[%s2561_s0 + $0x28] sm:$0xff] }
  0x2d   :  { %1832 = vmatpush3.bf16.msra.mxu1 %v1996_v51  ;;  %1811 = vmatprep.subr.bf16.mxu0 %v1997_v52  ;;  %v31_v51 = vld [vmem:[%s2561_s0 + $0x68] sm:$0xff]  ;;  %v1621_v52 = vcombine.low %v22_v48, %v30_v49 }
  0x2e   :  { %1833 = vmatprep.subr.bf16.mxu1 %v1998_v53  ;;  %v1622_v53 = vcombine.high %v22_v48, %v30_v49 }
  0x30   :  { %1812 = vmatpush3.bf16.msra.mxu0 %v1999_v54  ;;  %v1623_v54 = vcombine.low %v23_v50, %v31_v51 }
  0x31   :  { %1834 = vmatpush3.bf16.msra.mxu1 %v2000_v55  ;;  %1813 = vmatprep.subr.bf16.mxu0 %v2001_v56  ;;  %v1624_v55 = vcombine.high %v23_v50, %v31_v51  ;;  %v2049_v56 = vld [vmem:[%s2560_s1 + $0x340] sm:$0xff]  }
  0x32   :  { %1835 = vmatprep.subr.bf16.mxu1 %v2002_v57  ;;  %v2050_v57 = vld [vmem:[%s2560_s1 + $0x3c0] sm:$0xff]  }
  0x34   :  { %1814 = vmatpush3.bf16.msra.mxu0 %v2003_v58  ;;  %v2051_v58 = vld [vmem:[%s2560_s1 + $0x300] sm:$0xff]  }
  0x35   :  { %1836 = vmatpush3.bf16.msra.mxu1 %v2004_v59  ;;  %1815 = vmatprep.subr.bf16.mxu0 %v2005_v60  ;;  %v2052_v59 = vld [vmem:[%s2560_s1 + $0x380] sm:$0xff]   ;;  %v2053_v60 = vld [vmem:[%s2560_s1 + $0x348] sm:$0xff]  }
  0x36   :  { %1837 = vmatprep.subr.bf16.mxu1 %v2006_v61  ;;  %v2054_v61 = vld [vmem:[%s2560_s1 + $0x3c8] sm:$0xff]  }
  0x38   :  { %1816 = vmatpush3.bf16.msra.mxu0 %v2007_v62  ;;  %v2055_v62 = vld [vmem:[%s2560_s1 + $0x308] sm:$0xff]  }
  0x39   :  { %1838 = vmatpush3.bf16.msra.mxu1 %v2008_v63  ;;  %1817 = vmatprep.subr.bf16.mxu0 %v2009_v0  ;;  %v2056_v63 = vld [vmem:[%s2560_s1 + $0x388] sm:$0xff]   ;;  %v2057_v0 = vld [vmem:[%s2560_s1 + $0x350] sm:$0xff]  }
  0x3a   :  { %1839 = vmatprep.subr.bf16.mxu1 %v2010_v1  ;;  %v2058_v1 = vld [vmem:[%s2560_s1 + $0x3d0] sm:$0xff]  }
  0x3c   :  { %1818 = vmatpush3.bf16.msra.mxu0 %v2011_v2  ;;  %v2059_v2 = vld [vmem:[%s2560_s1 + $0x310] sm:$0xff]  }
  0x3d   :  { %1840 = vmatpush3.bf16.msra.mxu1 %v2012_v3  ;;  %1819 = vmatprep.subr.bf16.mxu0 %v2013_v4  ;;  %v2060_v3 = vld [vmem:[%s2560_s1 + $0x390] sm:$0xff]   ;;  %v2061_v4 = vld [vmem:[%s2560_s1 + $0x358] sm:$0xff]  }
  0x3e   :  { %1841 = vmatprep.subr.bf16.mxu1 %v2014_v5  ;;  %v2062_v5 = vld [vmem:[%s2560_s1 + $0x3d8] sm:$0xff]  }
  0x40   :  { %1820 = vmatpush3.bf16.msra.mxu0 %v2015_v6  ;;  %v2063_v6 = vld [vmem:[%s2560_s1 + $0x318] sm:$0xff]  }
  0x41   :  { %1842 = vmatpush3.bf16.msra.mxu1 %v2016_v7  ;;  %1849 = vmatprep.subr.bf16.mxu0 %v2017_v16  ;;  %v2064_v7 = vld [vmem:[%s2560_s1 + $0x398] sm:$0xff]   ;;  %v2073_v16 = vld [vmem:[%s2560_s1 + $0x370] sm:$0xff]  }
  0x42   :  { %1871 = vmatprep.subr.bf16.mxu1 %v2018_v17  ;;  %v2074_v17 = vld [vmem:[%s2560_s1 + $0x3f0] sm:$0xff]  }
  0x43   :  { %1260 = vmatmul.mubr.bf16.vlgmr.msra.gmra.mrb[4].mxu0 %v1617_v10  ;;  %v2067_v10 = vld [vmem:[%s2560_s1 + $0x320] sm:$0xff]  }
  0x44   :  { %1301 = vmatmul.mubr.bf16.vlgmr.msra.gmra.mrb[4].mxu1 %v1619_v14  ;;  %1850 = vmatpush3.bf16.msra.mxu0 %v2019_v18  ;;  %v2071_v14 = vld [vmem:[%s2560_s1 + $0x328] sm:$0xff]   ;;  %v2075_v18 = vld [vmem:[%s2560_s1 + $0x330] sm:$0xff]  }
  0x45   :  { %1872 = vmatpush3.bf16.msra.mxu1 %v2020_v19  ;;  %1851 = vmatprep.subr.bf16.mxu0 %v2021_v20  ;;  %v2076_v19 = vld [vmem:[%s2560_s1 + $0x3b0] sm:$0xff]   ;;  %v2077_v20 = vld [vmem:[%s2560_s1 + $0x378] sm:$0xff]  }
  0x46   :  { %1873 = vmatprep.subr.bf16.mxu1 %v2022_v21  ;;  %1341 = vmatprep.mubr.bf16.mxu0 %v1622_v53  ;;  %v2078_v21 = vld [vmem:[%s2560_s1 + $0x3f8] sm:$0xff]  }
  0x47   :  { %1382 = vmatprep.mubr.bf16.mxu1 %v1624_v55 }
  0x48   :  { %1852 = vmatpush3.bf16.msra.mxu0 %v2023_v22  ;;  %v2079_v22 = vld [vmem:[%s2560_s1 + $0x338] sm:$0xff]  }
  0x49   :  { %1874 = vmatpush3.bf16.msra.mxu1 %v2024_v23  ;;  %1853 = vmatprep.subr.bf16.mxu0 %v2025_v24  ;;  %v2080_v23 = vld [vmem:[%s2560_s1 + $0x3b8] sm:$0xff]   ;;  %v24_v24 = vld [vmem:[%s2561_s0 + $0x30] sm:$0xff] }
  0x4a   :  { %1875 = vmatprep.subr.bf16.mxu1 %v2026_v25  ;;  %v32_v25 = vld [vmem:[%s2561_s0 + $0x70] sm:$0xff] }
  0x4c   :  { %1854 = vmatpush3.bf16.msra.mxu0 %v2027_v26  ;;  %v25_v26 = vld [vmem:[%s2561_s0 + $0x38] sm:$0xff] }
  0x4d   :  { %1876 = vmatpush3.bf16.msra.mxu1 %v2028_v27  ;;  %1855 = vmatprep.subr.bf16.mxu0 %v2029_v28  ;;  %v1625_v27 = vcombine.low %v24_v24, %v32_v25  ;;  %v1626_v28 = vcombine.high %v24_v24, %v32_v25 }
  0x4e   :  { %1877 = vmatprep.subr.bf16.mxu1 %v2030_v29  ;;  %v33_v29 = vld [vmem:[%s2561_s0 + $0x78] sm:$0xff] }
  0x50   :  { %1856 = vmatpush3.bf16.msra.mxu0 %v2031_v30  ;;  %v1627_v30 = vcombine.low %v25_v26, %v33_v29 }
  0x51   :  { %1878 = vmatpush3.bf16.msra.mxu1 %v2032_v31  ;;  %1857 = vmatprep.subr.bf16.mxu0 %v2033_v32  ;;  %v1628_v31 = vcombine.high %v25_v26, %v33_v29 }
  0x52   :  { %1879 = vmatprep.subr.bf16.mxu1 %v2034_v33 }
  0x54   :  { %1858 = vmatpush3.bf16.msra.mxu0 %v2035_v34  ;;  %v1612_v34 = vld [vmem:[%s2562_s2] ss:$0 sm:$0xff] }
  0x55   :  { %1880 = vmatpush3.bf16.msra.mxu1 %v2036_v35  ;;  %1859 = vmatprep.subr.bf16.mxu0 %v2037_v36 }
  0x56   :  { %1881 = vmatprep.subr.bf16.mxu1 %v2038_v37 }
  0x58   :  { %1860 = vmatpush3.bf16.msra.mxu0 %v2039_v38 }
  0x59   :  { %1882 = vmatpush3.bf16.msra.mxu1 %v2040_v39  ;;  %1861 = vmatprep.subr.bf16.mxu0 %v2041_v40 }
  0x5a   :  { %1883 = vmatprep.subr.bf16.mxu1 %v2042_v41 }
  0x5c   :  { %1862 = vmatpush3.bf16.msra.mxu0 %v2043_v42 }
  0x5d   :  { %1884 = vmatpush3.bf16.msra.mxu1 %v2044_v43  ;;  %1863 = vmatprep.subr.bf16.mxu0 %v2045_v44 }
  0x5e   :  { %1885 = vmatprep.subr.bf16.mxu1 %v2046_v45 }
  0x60   :  { %1864 = vmatpush3.bf16.msra.mxu0 %v2047_v46 }
  0x61   :  { %1886 = vmatpush3.bf16.msra.mxu1 %v2048_v47  ;;  %1893 = vmatprep.subr.bf16.mxu0 %v2049_v56 }
  0x62   :  { %1915 = vmatprep.subr.bf16.mxu1 %v2050_v57 }
  0x63   :  { %1342 = vmatmul.mubr.bf16.vlgmr.msra.gmra.mrb[8].mxu0 %v1621_v52 }
  0x64   :  { %1383 = vmatmul.mubr.bf16.vlgmr.msra.gmra.mrb[8].mxu1 %v1623_v54  ;;  %1894 = vmatpush3.bf16.msra.mxu0 %v2051_v58 }
  0x65   :  { %1916 = vmatpush3.bf16.msra.mxu1 %v2052_v59  ;;  %1895 = vmatprep.subr.bf16.mxu0 %v2053_v60 }
  0x66   :  { %1917 = vmatprep.subr.bf16.mxu1 %v2054_v61  ;;  %1423 = vmatprep.mubr.bf16.mxu0 %v1626_v28 }
  0x67   :  { %1464 = vmatprep.mubr.bf16.mxu1 %v1628_v31 }
  0x68   :  { %1896 = vmatpush3.bf16.msra.mxu0 %v2055_v62 }
  0x69   :  { %1918 = vmatpush3.bf16.msra.mxu1 %v2056_v63  ;;  %1897 = vmatprep.subr.bf16.mxu0 %v2057_v0 }
  0x6a   :  { %1919 = vmatprep.subr.bf16.mxu1 %v2058_v1 }
  0x6c   :  { %1898 = vmatpush3.bf16.msra.mxu0 %v2059_v2 }
  0x6d   :  { %1920 = vmatpush3.bf16.msra.mxu1 %v2060_v3  ;;  %1899 = vmatprep.subr.bf16.mxu0 %v2061_v4 }
  0x6e   :  { %1921 = vmatprep.subr.bf16.mxu1 %v2062_v5 }
  0x70   :  { %1900 = vmatpush3.bf16.msra.mxu0 %v2063_v6 }
  0x71   :  { %1922 = vmatpush3.bf16.msra.mxu1 %v2064_v7  ;;  %1901 = vmatprep.subr.bf16.mxu0 %v2065_v8 }
  0x72   :  { %1923 = vmatprep.subr.bf16.mxu1 %v2066_v9 }
  0x74   :  { %1902 = vmatpush3.bf16.msra.mxu0 %v2067_v10 }
  0x75   :  { %1924 = vmatpush3.bf16.msra.mxu1 %v2068_v11  ;;  %1903 = vmatprep.subr.bf16.mxu0 %v2069_v12 }
  0x76   :  { %1925 = vmatprep.subr.bf16.mxu1 %v2070_v13 }
  0x78   :  { %1904 = vmatpush3.bf16.msra.mxu0 %v2071_v14 }
  0x79   :  { %1926 = vmatpush3.bf16.msra.mxu1 %v2072_v15  ;;  %1905 = vmatprep.subr.bf16.mxu0 %v2073_v16 }
  0x7a   :  { %1927 = vmatprep.subr.bf16.mxu1 %v2074_v17 }
  0x7c   :  { %1906 = vmatpush3.bf16.msra.mxu0 %v2075_v18 }
  0x7d   :  { %1928 = vmatpush3.bf16.msra.mxu1 %v2076_v19  ;;  %1907 = vmatprep.subr.bf16.mxu0 %v2077_v20 }
  0x7e   :  { %1929 = vmatprep.subr.bf16.mxu1 %v2078_v21 }
  0x80   :  { %1908 = vmatpush3.bf16.msra.mxu0 %v2079_v22 }
  0x81   :  { %1930 = vmatpush3.bf16.msra.mxu1 %v2080_v23 }
  0x83   :  { %1424 = vmatmul.mubr.bf16.vlgmr.msra.gmra.mrb[12].mxu0 %v1625_v27 }
  0x84   :  { %1465 = vmatmul.mubr.bf16.vlgmr.msra.gmra.mrb[12].mxu1 %v1627_v30 }
  0xf6   :  { %v1777_v32 = vpop.f32.mrb[0].mxu0 }
  0xf7   :  { %v1799_v33 = vpop.f32.mrb[0].mxu1  ;;  %v1778_v35 = vpop.f32.mrb[1].mxu0 }
  0xf8   :  { %v1779_v36 = vadd.f32 %v1778_v35, %v1777_v32  ;;  %v1800_v37 = vpop.f32.mrb[1].mxu1  ;;  %v1780_v38 = vpop.f32.mrb[2].mxu0  ;;  %v1473_v35 = vlaneseq }
  0xf9   :  { %v1801_v39 = vadd.f32 %v1800_v37, %v1799_v33  ;;  %v1802_v40 = vpop.f32.mrb[2].mxu1  ;;  %v1781_v41 = vpop.f32.mrb[3].mxu0 }
  0xfa   :  { %v1180_v42 = vadd.f32 %v1779_v36, %v1612_v34  ;;  %v1782_v43 = vadd.f32 %v1781_v41, %v1780_v38  ;;  %v1803_v44 = vpop.f32.mrb[3].mxu1  ;;  %v1474_v36 = vand.u32 127, %v1473_v35 }
  0xfb   :  { %v1804_v45 = vadd.f32 %v1803_v44, %v1802_v40 }
  0xfc   :  { %v1221_v46 = vadd.f32 %v1801_v39, %v1180_v42  ;;  %v1183_v47 = vadd.f32 %v1782_v43, %v1612_v34 }
  0xfe   :  { %v1224_v48 = vadd.f32 %v1804_v45, %v1183_v47 }
 0x116   :  { %v1821_v49 = vpop.f32.mrb[4].mxu0 }
 0x117   :  { %v1843_v50 = vpop.f32.mrb[4].mxu1  ;;  %v1822_v51 = vpop.f32.mrb[5].mxu0 }
 0x118   :  { %v1823_v52 = vadd.f32 %v1822_v51, %v1821_v49  ;;  %v1844_v53 = vpop.f32.mrb[5].mxu1  ;;  %v1824_v54 = vpop.f32.mrb[6].mxu0 }
 0x119   :  { %v1845_v55 = vadd.f32 %v1844_v53, %v1843_v50  ;;  %v1846_v56 = vpop.f32.mrb[6].mxu1  ;;  %v1825_v57 = vpop.f32.mrb[7].mxu0 }
 0x11a   :  { %v1262_v58 = vadd.f32 %v1823_v52, %v1221_v46  ;;  %v1826_v59 = vadd.f32 %v1825_v57, %v1824_v54  ;;  %v1847_v60 = vpop.f32.mrb[7].mxu1 }
 0x11b   :  { %v1848_v61 = vadd.f32 %v1847_v60, %v1846_v56  ;;  %v1523_v56 = vld [vmem:[%s2563_s3 + $0x8] sm:$0xff] }
 0x11c   :  { %v1303_v62 = vadd.f32 %v1845_v55, %v1262_v58  ;;  %v1265_v63 = vadd.f32 %v1826_v59, %v1224_v48  ;;  %v1522_v55 = vld [vmem:[%s2563_s3] sm:$0xff] }
 0x11d   :  { %v1948_v57 = vpack.c.bf16 %v1523_v56, %v1522_v55 }
 0x11e   :  { %v1306_v0 = vadd.f32 %v1848_v61, %v1265_v63 }
 0x11f   :  { %1949 = vmatprep.subr.bf16.mxu0 %v1948_v57 }
 0x120   :  { %1951 = vmatpush3.bf16.msra.mxu0 %v1948_v57 }
 0x136   :  { %v1865_v1 = vpop.f32.mrb[8].mxu0 }
 0x137   :  { %v1887_v2 = vpop.f32.mrb[8].mxu1  ;;  %v1866_v3 = vpop.f32.mrb[9].mxu0 }
 0x138   :  { %v1888_v4 = vpop.f32.mrb[9].mxu1  ;;  %v1867_v5 = vadd.f32 %v1866_v3, %v1865_v1  ;;  %v1868_v7 = vpop.f32.mrb[10].mxu0  ;;  %v2081_v3 = vmov 0.0  }
 0x139   :  { %v1889_v6 = vadd.f32 %v1888_v4, %v1887_v2  ;;  %v1890_v8 = vpop.f32.mrb[10].mxu1  ;;  %v1869_v9 = vpop.f32.mrb[11].mxu0 }
 0x13a   :  { %v1891_v10 = vpop.f32.mrb[11].mxu1  ;;  %v1344_v11 = vadd.f32 %v1867_v5, %v1303_v62  ;;  %v1870_v12 = vadd.f32 %v1869_v9, %v1868_v7 }
 0x13b   :  { %v1892_v13 = vadd.f32 %v1891_v10, %v1890_v8 }
 0x13c   :  { %v1385_v14 = vadd.f32 %v1889_v6, %v1344_v11  ;;  %v1347_v15 = vadd.f32 %v1870_v12, %v1306_v0 }
 0x13e   :  { %v1388_v16 = vadd.f32 %v1892_v13, %v1347_v15 }
 0x156   :  { %v1909_v17 = vpop.f32.mrb[12].mxu0 }
 0x157   :  { %v1931_v18 = vpop.f32.mrb[12].mxu1  ;;  %v1910_v19 = vpop.f32.mrb[13].mxu0 }
 0x158   :  { %v1911_v20 = vadd.f32 %v1910_v19, %v1909_v17  ;;  %v1932_v21 = vpop.f32.mrb[13].mxu1  ;;  %v1912_v22 = vpop.f32.mrb[14].mxu0 }
 0x159   :  { %v1933_v23 = vadd.f32 %v1932_v21, %v1931_v18  ;;  %v1934_v24 = vpop.f32.mrb[14].mxu1  ;;  %v1913_v25 = vpop.f32.mrb[15].mxu0 }
 0x15a   :  { %v1426_v26 = vadd.f32 %v1911_v20, %v1385_v14  ;;  %v1914_v27 = vadd.f32 %v1913_v25, %v1912_v22  ;;  %v1935_v28 = vpop.f32.mrb[15].mxu1 }
 0x15b   :  { %v1936_v29 = vadd.f32 %v1935_v28, %v1934_v24 }
 0x15c   :  { %v1429_v30 = vadd.f32 %v1914_v27, %v1388_v16  ;;  %v1467_v31 = vadd.f32 %v1933_v23, %v1426_v26 }
 0x15e   :  { %v1476_v32 = vsel %vm1475_vm0, %v1467_v31, -inf  ;;  %v1470_v33 = vadd.f32 %v1936_v29, %v1429_v30 }
 0x15f   :  { %1477 = vmax.xlane.f32.xlu0 %v1476_v32 }
 0x160   :  { %v1479_v34 = vsel %vm1475_vm0, %v1470_v33, -inf }
 0x163   :  { %1480 = vmax.xlane.f32.xlu0 %v1479_v34 }
 0x1ec   :  { %v1478_v37 = vpop.xlane.xlu0 %1477 }
 0x1ed   :  { %vm1482_vm1 = vcmp.eq.f32.partialorder %v1467_v31, %v1478_v37 }
 0x1ee   :  { %v1484_v38 = vsel %vm1482_vm1, %v1474_v36, 8 }
 0x1ef   :  { %v1486_v39 = vsel %vm1475_vm0, %v1484_v38, 2147483647 }
 0x1f0   :  { %v1481_v40 = vpop.xlane.xlu0 %1480  ;;  %v1488_v41 = vshra.s32 %v1486_v39, 16  ;;  %v1487_v47 = vand.u32 65535, %v1486_v39 }
 0x1f1   :  { %vm1483_vm2 = vcmp.eq.f32.partialorder %v1470_v33, %v1481_v40 }
 0x1f2   :  { %v1485_v42 = vsel %vm1483_vm2, %v1474_v36, 8  ;;  %v1490_v43 = vcvt.s32.f32 %v1488_v41  ;;  %v1489_v49 = vcvt.s32.f32 %v1487_v47 }
 0x1f3   :  { %v1501_v44 = vsel %vm1475_vm0, %v1485_v42, 2147483647 }
 0x1f4   :  { %1491 = vmin.xlane.f32.xlu1 %v1490_v43  ;;  %v1503_v45 = vshra.s32 %v1501_v44, 16  ;;  %v1502_v50 = vand.u32 65535, %v1501_v44 }
 0x1f6   :  { %v1505_v46 = vcvt.s32.f32 %v1503_v45  ;;  %v1504_v53 = vcvt.s32.f32 %v1502_v50 }
 0x1f8   :  { %1506 = vmin.xlane.f32.xlu1 %v1505_v46 }
 0x281   :  { %v1492_v48 = vpop.xlane.xlu1 %1491 }
 0x282   :  { %vm1493_vm3 = vcmp.eq.f32.partialorder %v1490_v43, %v1492_v48  ;;  %v1498_v58 = vcvt.f32.s32 %v1492_v48 }
 0x283   :  { %v1494_v51 = vsel %vm1493_vm3, %v1489_v49, inf }
 0x284   :  { %1495 = vmin.xlane.f32.xlu0 %v1494_v51  ;;  %v1499_v60 = vshll.u32 %v1498_v58, 16 }
 0x285   :  { %v1507_v52 = vpop.xlane.xlu1 %1506 }
 0x286   :  { %vm1508_vm4 = vcmp.eq.f32.partialorder %v1505_v46, %v1507_v52  ;;  %v1513_v61 = vcvt.f32.s32 %v1507_v52 }
 0x287   :  { %v1509_v54 = vsel %vm1508_vm4, %v1504_v53, inf }
 0x288   :  { %1510 = vmin.xlane.f32.xlu1 %v1509_v54  ;;  %v1514_v1 = vshll.u32 %v1513_v61, 16 }
 0x311   :  { %v1496_v59 = vpop.xlane.xlu0 %1495 }
 0x312   :  { %v1497_v62 = vcvt.f32.s32 %v1496_v59 }
 0x314   :  { %v1500_v63 = vadd.s32 %v1499_v60, %v1497_v62 }
 0x315   :  { %v1511_v0 = vpop.xlane.xlu1 %1510 }
 0x316   :  { %vm1516_vm6 = vcmp.eq.s32.totalorder %v1474_v36, %v1500_v63  ;;  %v1512_v2 = vcvt.f32.s32 %v1511_v0 }
 0x317   :  { %v1757_v4 = vsel %vm1516_vm6, 1.0, %v2081_v3 }
 0x318   :  { %v1515_v5 = vadd.s32 %v1514_v1, %v1512_v2  ;;  %1945 = vmatprep.mubr.msk.f32.mxu0 %vm1524_vm5, %v1757_v4 }
 0x31a   :  { %vm1517_vm7 = vcmp.eq.s32.totalorder %v1474_v36, %v1515_v5 }
 0x31b   :  { %v1758_v6 = vsel %vm1517_vm7, 1.0, %v2081_v3 }
 0x31c   :  { %1946 = vmatmul.mubr.msk.f32.vlgmr.msra.gmra.mrb[16].mxu0 %vm1524_vm5, %v1758_v6 }
 0x3ef   :  { %v1947_v7 = vpop.f32.mrb[16].mxu0 }
 0x3f0   :  { %1607 = vst.msk [vmem:[%s2564_s4 + $0x8] sm:$0xff] %vm1475_vm0, %v1947_v7  ;;  %v1597_v8 = vpop.f32.mrb[17].mxu0 }
 0x3f1   :  { %1606 = vst.msk [vmem:[%s2564_s4] sm:$0xff] %vm1475_vm0, %v1597_v8 }

// kernel: rqvae_forward.10
= control target key start
LH: loop header
LB: loop body
LE: loop exit
PB: predicated region body
PF: predicated region fallthrough
CT: control target
= control target key end

     0   :  { %s2012_s12 = smov 0   ;;  %s2014_s13 = smov 0   ;;  %s2498_s0 = inlined_call_operand.vmem [shape: bf16[32,1152], index: 0, kind: input, shape index: {}]   ;;  %s2499_s1 = inlined_call_operand.vmem [shape: bf16[1152,256], index: 1, kind: input, shape index: {}]   ;;  %s2500_s2 = inlined_call_operand.vmem [shape: f32[1,256], index: 2, kind: input, shape index: {}]   ;;  %s2501_s3 = inlined_call_operand.vmem [shape: bf16[32,256], index: 3, kind: output, shape index: {}]  }
   0x1   :  { %s2016_s14 = smov 0  }
   0x2 LB: > { %s25_s15 = sadd.s32 1, %s1985_s13  ;;  %p1526_p0 = scmp.ge.s32.totalorder %s1989_s14, 1  ;;  %s1989_s14 = sphi %s2016_s14, %s13_s14   ;;  %s1985_s13 = sphi %s2014_s13, %s2503_s13   ;;  %s1981_s12 = sphi %s2012_s12, %s2502_s12  }
   0x3   : > { %p27_p1 = scmp.ge.s32.totalorder %s25_s15, 2  ;;  %p174_p2 = scmp.lt.s32.totalorder %s1989_s14, 3 }
   0x5   : > { %s2505_s15 = smov (%p27_p1, %s25_s15), 0  ;;  %p175_p3 = pnand %p1526_p0, %p174_p2 }
   0x6   : > { %v1738_v0 = vld [vmem:[%s2499_s1 + $0x4] ss:$8 sps:$4 sm:$0xff] (!%p175_p3)   ;;  %v1742_v2 = vld [vmem:[%s2499_s1] ss:$8 sps:$4 sm:$0xff] (!%p175_p3)   ;;  %v1744_v4 = vld [vmem:[%s2499_s1 + $0x14] ss:$8 sps:$4 sm:$0xff] (!%p175_p3)  }
   0x7   : > { %178 = sbr.rel (%p175_p3) target bundleno = 390 (0x186), region = 32  ;;  %v1740_v1 = vld [vmem:[%s2499_s1 + $0x204] ss:$8 sps:$4 sm:$0xff] (!%p175_p3)   ;;  %1176 = vmatprep.subr.bf16.mxu1 (!%p175_p3), %v1738_v0  ;;  %v1743_v3 = vld [vmem:[%s2499_s1 + $0x200] ss:$8 sps:$4 sm:$0xff] (!%p175_p3)   ;;  %s1527_s30 = sshll.u32 (!%p175_p3), %s1981_s12, 1 }
   0x8   : > { %1262 = vmatprep.subr.bf16.mxu0 (!%p175_p3), %v1740_v1  ;;  %1177 = vmatpush1.bf16.msra.mxu1 (!%p175_p3), %v1742_v2  ;;  %v1746_v5 = vld [vmem:[%s2499_s1 + $0x214] ss:$8 sps:$4 sm:$0xff] (!%p175_p3)   ;;  %v1748_v6 = vld [vmem:[%s2499_s1 + $0x10] ss:$8 sps:$4 sm:$0xff] (!%p175_p3)   ;;  %v1750_v8 = vld [vmem:[%s2499_s1 + $0x24] ss:$8 sps:$4 sm:$0xff] (!%p175_p3)  }
   0x9   : > { %1263 = vmatpush1.bf16.msra.mxu0 (!%p175_p3), %v1743_v3  ;;  %1178 = vmatprep.subr.bf16.mxu1 (!%p175_p3), %v1744_v4  ;;  %v1749_v7 = vld [vmem:[%s2499_s1 + $0x210] ss:$8 sps:$4 sm:$0xff] (!%p175_p3)   ;;  %v1752_v9 = vld [vmem:[%s2499_s1 + $0x224] ss:$8 sps:$4 sm:$0xff] (!%p175_p3)   ;;  %v1754_v10 = vld [vmem:[%s2499_s1 + $0x20] ss:$8 sps:$4 sm:$0xff] (!%p175_p3)  }
   0xa   : > { %1264 = vmatprep.subr.bf16.mxu0 (!%p175_p3), %v1746_v5  ;;  %v1755_v11 = vld [vmem:[%s2499_s1 + $0x220] ss:$8 sps:$4 sm:$0xff] (!%p175_p3)   ;;  %v1756_v12 = vld [vmem:[%s2499_s1 + $0x34] ss:$8 sps:$4 sm:$0xff] (!%p175_p3)   ;;  %v1760_v14 = vld [vmem:[%s2499_s1 + $0x30] ss:$8 sps:$4 sm:$0xff] (!%p175_p3)  }
   0xb   : > { %v1758_v13 = vld [vmem:[%s2499_s1 + $0x234] ss:$8 sps:$4 sm:$0xff] (!%p175_p3)   ;;  %v1761_v15 = vld [vmem:[%s2499_s1 + $0x230] ss:$8 sps:$4 sm:$0xff] (!%p175_p3)   ;;  %v1762_v16 = vld [vmem:[%s2499_s1 + $0x44] ss:$8 sps:$4 sm:$0xff] (!%p175_p3)  }
   0xc   : > { %1179 = vmatpush1.bf16.msra.mxu1 (!%p175_p3), %v1748_v6  ;;  %v1764_v17 = vld [vmem:[%s2499_s1 + $0x244] ss:$8 sps:$4 sm:$0xff] (!%p175_p3)   ;;  %v1766_v18 = vld [vmem:[%s2499_s1 + $0x40] ss:$8 sps:$4 sm:$0xff] (!%p175_p3)   ;;  %v1768_v20 = vld [vmem:[%s2499_s1 + $0x54] ss:$8 sps:$4 sm:$0xff] (!%p175_p3)  }
   0xd   : > { %1265 = vmatpush1.bf16.msra.mxu0 (!%p175_p3), %v1749_v7  ;;  %1180 = vmatprep.subr.bf16.mxu1 (!%p175_p3), %v1750_v8  ;;  %v1767_v19 = vld [vmem:[%s2499_s1 + $0x240] ss:$8 sps:$4 sm:$0xff] (!%p175_p3)   ;;  %v1770_v21 = vld [vmem:[%s2499_s1 + $0x254] ss:$8 sps:$4 sm:$0xff] (!%p175_p3)   ;;  %v1772_v22 = vld [vmem:[%s2499_s1 + $0x50] ss:$8 sps:$4 sm:$0xff] (!%p175_p3)  }
   0xe   : > { %1266 = vmatprep.subr.bf16.mxu0 %v1752_v9  ;;  %v1773_v23 = vld [vmem:[%s2499_s1 + $0x250] ss:$8 sps:$4 sm:$0xff]   ;;  %v1774_v24 = vld [vmem:[%s2499_s1 + $0x64] ss:$8 sps:$4 sm:$0xff]   ;;  %v1778_v26 = vld [vmem:[%s2499_s1 + $0x60] ss:$8 sps:$4 sm:$0xff]  }
   0xf   : > { %v1776_v25 = vld [vmem:[%s2499_s1 + $0x264] ss:$8 sps:$4 sm:$0xff]   ;;  %v1779_v27 = vld [vmem:[%s2499_s1 + $0x260] ss:$8 sps:$4 sm:$0xff]   ;;  %v1780_v28 = vld [vmem:[%s2499_s1 + $0x74] ss:$8 sps:$4 sm:$0xff]  }
  0x10   : > { %1181 = vmatpush1.bf16.msra.mxu1 %v1754_v10  ;;  %v1782_v29 = vld [vmem:[%s2499_s1 + $0x274] ss:$8 sps:$4 sm:$0xff]   ;;  %v1784_v30 = vld [vmem:[%s2499_s1 + $0x70] ss:$8 sps:$4 sm:$0xff]   ;;  %v1786_v32 = vld [vmem:[%s2499_s1 + $0x84] ss:$8 sps:$4 sm:$0xff]  }
  0x11   : > { %1267 = vmatpush1.bf16.msra.mxu0 %v1755_v11  ;;  %1182 = vmatprep.subr.bf16.mxu1 %v1756_v12  ;;  %v1785_v31 = vld [vmem:[%s2499_s1 + $0x270] ss:$8 sps:$4 sm:$0xff]   ;;  %p214_p4 = scmp.lt.s32.totalorder %s1527_s30, 3  ;;  %v1788_v33 = vld [vmem:[%s2499_s1 + $0x284] ss:$8 sps:$4 sm:$0xff]  }
  0x12   : > { %1268 = vmatprep.subr.bf16.mxu0 %v1758_v13  ;;  %v1790_v34 = vld [vmem:[%s2499_s1 + $0x80] ss:$8 sps:$4 sm:$0xff]   ;;  %v1792_v36 = vld [vmem:[%s2499_s1 + $0x94] ss:$8 sps:$4 sm:$0xff]   ;;  %v1796_v38 = vld [vmem:[%s2499_s1 + $0x90] ss:$8 sps:$4 sm:$0xff]  }
  0x13   : > { %v1791_v35 = vld [vmem:[%s2499_s1 + $0x280] ss:$8 sps:$4 sm:$0xff]   ;;  %s2507_s30 = smov (!%p214_p4, %s1527_s30), 3  ;;  %v1794_v37 = vld [vmem:[%s2499_s1 + $0x294] ss:$8 sps:$4 sm:$0xff]  }
  0x14   : > { %1183 = vmatpush1.bf16.msra.mxu1 %v1760_v14  ;;  %v1797_v39 = vld [vmem:[%s2499_s1 + $0x290] ss:$8 sps:$4 sm:$0xff]   ;;  %v1798_v40 = vld [vmem:[%s2499_s1 + $0xa4] ss:$8 sps:$4 sm:$0xff]   ;;  %s1712_s29 = smul.u32 36, %s2507_s30 }
  0x15   : > { %1269 = vmatpush1.bf16.msra.mxu0 %v1761_v15  ;;  %1184 = vmatprep.subr.bf16.mxu1 %v1762_v16  ;;  %v1800_v41 = vld [vmem:[%s2499_s1 + $0x2a4] ss:$8 sps:$4 sm:$0xff]   ;;  %v1802_v42 = vld [vmem:[%s2499_s1 + $0xa0] ss:$8 sps:$4 sm:$0xff]   ;;  %v1804_v44 = vld [vmem:[%s2499_s1 + $0xb4] ss:$8 sps:$4 sm:$0xff]  }
  0x16   : > { %1270 = vmatprep.subr.bf16.mxu0 %v1764_v17  ;;  %v1803_v43 = vld [vmem:[%s2499_s1 + $0x2a0] ss:$8 sps:$4 sm:$0xff]   ;;  %s2174_s17 = scalar_lea.vmem %s2498_s0, %s1712_s29  ;;  %v1806_v45 = vld [vmem:[%s2499_s1 + $0x2b4] ss:$8 sps:$4 sm:$0xff]   ;;  %v1808_v46 = vld [vmem:[%s2499_s1 + $0xb0] ss:$8 sps:$4 sm:$0xff]  }
  0x17   : > { %v1809_v47 = vld [vmem:[%s2499_s1 + $0x2b0] ss:$8 sps:$4 sm:$0xff]   ;;  %v1836_v48 = vld [vmem:[%s2174_s17 + $0x4] ss:$36 sps:$4 sm:$0xff]   ;;  %v1816_v54 = vld [vmem:[%s2499_s1 + $0xd4] ss:$8 sps:$4 sm:$0xff]  }
  0x18   : > { %1185 = vmatpush1.bf16.msra.mxu1 %v1766_v18  ;;  %v1810_v49 = vld [vmem:[%s2499_s1 + $0xc4] ss:$8 sps:$4 sm:$0xff]   ;;  %1208 = vmatprep.mubr.bf16.mxu1 %v1836_v48  ;;  %v1842_v51 = vld [vmem:[%s2174_s17 + $0x14] ss:$36 sps:$4 sm:$0xff]   ;;  %v1814_v52 = vld [vmem:[%s2499_s1 + $0xc0] ss:$8 sps:$4 sm:$0xff]  }
  0x19   : > { %1271 = vmatpush1.bf16.msra.mxu0 %v1767_v19  ;;  %1186 = vmatprep.subr.bf16.mxu1 %v1768_v20  ;;  %v1812_v50 = vld [vmem:[%s2499_s1 + $0x2c4] ss:$8 sps:$4 sm:$0xff]   ;;  %v1815_v53 = vld [vmem:[%s2499_s1 + $0x2c0] ss:$8 sps:$4 sm:$0xff]   ;;  %v1818_v55 = vld [vmem:[%s2499_s1 + $0x2d4] ss:$8 sps:$4 sm:$0xff]  }
  0x1a   : > { %1272 = vmatprep.subr.bf16.mxu0 %v1770_v21  ;;  %1294 = vmatprep.mubr.bf16.mxu0 %v1842_v51  ;;  %v1820_v56 = vld [vmem:[%s2499_s1 + $0xd0] ss:$8 sps:$4 sm:$0xff]   ;;  %v1822_v58 = vld [vmem:[%s2499_s1 + $0xe4] ss:$8 sps:$4 sm:$0xff]   ;;  %v1826_v60 = vld [vmem:[%s2499_s1 + $0xe0] ss:$8 sps:$4 sm:$0xff]  }
  0x1b   : > { %v1821_v57 = vld [vmem:[%s2499_s1 + $0x2d0] ss:$8 sps:$4 sm:$0xff]   ;;  %v1824_v59 = vld [vmem:[%s2499_s1 + $0x2e4] ss:$8 sps:$4 sm:$0xff]   ;;  %v1827_v61 = vld [vmem:[%s2499_s1 + $0x2e0] ss:$8 sps:$4 sm:$0xff]  }
  0x1c   : > { %1187 = vmatpush1.bf16.msra.mxu1 %v1772_v22  ;;  %v1828_v62 = vld [vmem:[%s2499_s1 + $0xf4] ss:$8 sps:$4 sm:$0xff]   ;;  %v1832_v0 = vld [vmem:[%s2499_s1 + $0xf0] ss:$8 sps:$4 sm:$0xff]   ;;  %v1839_v2 = vld [vmem:[%s2499_s1 + $0x104] ss:$8 sps:$4 sm:$0xff]  }
  0x1d   : > { %1273 = vmatpush1.bf16.msra.mxu0 %v1773_v23  ;;  %1188 = vmatprep.subr.bf16.mxu1 %v1774_v24  ;;  %v1830_v63 = vld [vmem:[%s2499_s1 + $0x2f4] ss:$8 sps:$4 sm:$0xff]   ;;  %v1833_v1 = vld [vmem:[%s2499_s1 + $0x2f0] ss:$8 sps:$4 sm:$0xff]   ;;  %v1845_v3 = vld [vmem:[%s2499_s1 + $0x304] ss:$8 sps:$4 sm:$0xff]  }
  0x1e   : > { %1274 = vmatprep.subr.bf16.mxu0 %v1776_v25  ;;  %v1834_v4 = vld [vmem:[%s2174_s17] ss:$36 sps:$4 sm:$0xff]   ;;  %v1840_v6 = vld [vmem:[%s2174_s17 + $0x10] ss:$36 sps:$4 sm:$0xff]  }
  0x1f   : > { %v1837_v5 = vld [vmem:[%s2499_s1 + $0x100] ss:$8 sps:$4 sm:$0xff]   ;;  %v1848_v8 = vld [vmem:[%s2499_s1 + $0x114] ss:$8 sps:$4 sm:$0xff]   ;;  %v1846_v10 = vld [vmem:[%s2499_s1 + $0x110] ss:$8 sps:$4 sm:$0xff]  }
  0x20   : > { %1189 = vmatpush1.bf16.msra.mxu1 %v1778_v26  ;;  %v1843_v7 = vld [vmem:[%s2499_s1 + $0x300] ss:$8 sps:$4 sm:$0xff]   ;;  %v1851_v9 = vld [vmem:[%s2499_s1 + $0x314] ss:$8 sps:$4 sm:$0xff]   ;;  %v1849_v11 = vld [vmem:[%s2499_s1 + $0x310] ss:$8 sps:$4 sm:$0xff]  }
  0x21   : > { %1275 = vmatpush1.bf16.msra.mxu0 %v1779_v27  ;;  %1190 = vmatprep.subr.bf16.mxu1 %v1780_v28  ;;  %v1854_v12 = vld [vmem:[%s2499_s1 + $0x124] ss:$8 sps:$4 sm:$0xff]   ;;  %v1852_v14 = vld [vmem:[%s2499_s1 + $0x120] ss:$8 sps:$4 sm:$0xff]   ;;  %v1860_v16 = vld [vmem:[%s2499_s1 + $0x134] ss:$8 sps:$4 sm:$0xff]  }
  0x22   : > { %1276 = vmatprep.subr.bf16.mxu0 %v1782_v29  ;;  %v1857_v13 = vld [vmem:[%s2499_s1 + $0x324] ss:$8 sps:$4 sm:$0xff]   ;;  %v1855_v15 = vld [vmem:[%s2499_s1 + $0x320] ss:$8 sps:$4 sm:$0xff]   ;;  %v1863_v17 = vld [vmem:[%s2499_s1 + $0x334] ss:$8 sps:$4 sm:$0xff]  }
  0x23   : > { %v1858_v18 = vld [vmem:[%s2499_s1 + $0x130] ss:$8 sps:$4 sm:$0xff]   ;;  %v1866_v20 = vld [vmem:[%s2499_s1 + $0x144] ss:$8 sps:$4 sm:$0xff]   ;;  %v1864_v22 = vld [vmem:[%s2499_s1 + $0x140] ss:$8 sps:$4 sm:$0xff]  }
  0x24   : > { %1191 = vmatpush1.bf16.msra.mxu1 %v1784_v30  ;;  %v1861_v19 = vld [vmem:[%s2499_s1 + $0x330] ss:$8 sps:$4 sm:$0xff]   ;;  %v1869_v21 = vld [vmem:[%s2499_s1 + $0x344] ss:$8 sps:$4 sm:$0xff]   ;;  %v1867_v23 = vld [vmem:[%s2499_s1 + $0x340] ss:$8 sps:$4 sm:$0xff]  }
  0x25   : > { %1277 = vmatpush1.bf16.msra.mxu0 %v1785_v31  ;;  %1192 = vmatprep.subr.bf16.mxu1 %v1786_v32  ;;  %v1872_v24 = vld [vmem:[%s2499_s1 + $0x154] ss:$8 sps:$4 sm:$0xff]   ;;  %v1870_v26 = vld [vmem:[%s2499_s1 + $0x150] ss:$8 sps:$4 sm:$0xff]   ;;  %v1878_v28 = vld [vmem:[%s2499_s1 + $0x164] ss:$8 sps:$4 sm:$0xff]  }
  0x26   : > { %1278 = vmatprep.subr.bf16.mxu0 %v1788_v33  ;;  %v1875_v25 = vld [vmem:[%s2499_s1 + $0x354] ss:$8 sps:$4 sm:$0xff]   ;;  %v1873_v27 = vld [vmem:[%s2499_s1 + $0x350] ss:$8 sps:$4 sm:$0xff]   ;;  %v1881_v29 = vld [vmem:[%s2499_s1 + $0x364] ss:$8 sps:$4 sm:$0xff]  }
  0x27   : > { %v1876_v30 = vld [vmem:[%s2499_s1 + $0x160] ss:$8 sps:$4 sm:$0xff]   ;;  %v1884_v32 = vld [vmem:[%s2499_s1 + $0x174] ss:$8 sps:$4 sm:$0xff]  }
  0x28   : > { %1193 = vmatpush1.bf16.msra.mxu1 %v1790_v34  ;;  %v1879_v31 = vld [vmem:[%s2499_s1 + $0x360] ss:$8 sps:$4 sm:$0xff]   ;;  %v1887_v33 = vld [vmem:[%s2499_s1 + $0x374] ss:$8 sps:$4 sm:$0xff]   ;;  %v1938_v34 = vld [vmem:[%s2174_s17 + $0xc] ss:$36 sps:$4 sm:$0xff]  }
  0x29   : > { %1279 = vmatpush1.bf16.msra.mxu0 %v1791_v35  ;;  %1194 = vmatprep.subr.bf16.mxu1 %v1792_v36  ;;  %v1941_v35 = vld [vmem:[%s2174_s17 + $0x1c] ss:$36 sps:$4 sm:$0xff]   ;;  %v1882_v36 = vld [vmem:[%s2499_s1 + $0x170] ss:$8 sps:$4 sm:$0xff]  }
  0x2a   : > { %1280 = vmatprep.subr.bf16.mxu0 %v1794_v37  ;;  %v1885_v37 = vld [vmem:[%s2499_s1 + $0x370] ss:$8 sps:$4 sm:$0xff]   ;;  %v1900_v48 = vld [vmem:[%s2499_s1 + $0x1a0] ss:$8 sps:$4 sm:$0xff]   ;;  %v1911_v51 = vld [vmem:[%s2499_s1 + $0x3b4] ss:$8 sps:$4 sm:$0xff]  }
  0x2c   : > { %1195 = vmatpush1.bf16.msra.mxu1 %v1796_v38  ;;  %v1890_v38 = vld [vmem:[%s2499_s1 + $0x184] ss:$8 sps:$4 sm:$0xff]  }
  0x2d   : > { %1281 = vmatpush1.bf16.msra.mxu0 %v1797_v39  ;;  %1196 = vmatprep.subr.bf16.mxu1 %v1798_v40  ;;  %v1893_v39 = vld [vmem:[%s2499_s1 + $0x384] ss:$8 sps:$4 sm:$0xff]   ;;  %v1888_v40 = vld [vmem:[%s2499_s1 + $0x180] ss:$8 sps:$4 sm:$0xff]  }
  0x2e   : > { %1282 = vmatprep.subr.bf16.mxu0 %v1800_v41  ;;  %v1891_v41 = vld [vmem:[%s2499_s1 + $0x380] ss:$8 sps:$4 sm:$0xff]  }
  0x30   : > { %1197 = vmatpush1.bf16.msra.mxu1 %v1802_v42  ;;  %v1896_v42 = vld [vmem:[%s2499_s1 + $0x194] ss:$8 sps:$4 sm:$0xff]  }
  0x31   : > { %1283 = vmatpush1.bf16.msra.mxu0 %v1803_v43  ;;  %1198 = vmatprep.subr.bf16.mxu1 %v1804_v44  ;;  %v1899_v43 = vld [vmem:[%s2499_s1 + $0x394] ss:$8 sps:$4 sm:$0xff]   ;;  %v1894_v44 = vld [vmem:[%s2499_s1 + $0x190] ss:$8 sps:$4 sm:$0xff]  }
  0x32   : > { %1284 = vmatprep.subr.bf16.mxu0 %v1806_v45  ;;  %v1897_v45 = vld [vmem:[%s2499_s1 + $0x390] ss:$8 sps:$4 sm:$0xff]  }
  0x34   : > { %1199 = vmatpush1.bf16.msra.mxu1 %v1808_v46  ;;  %v1902_v46 = vld [vmem:[%s2499_s1 + $0x1a4] ss:$8 sps:$4 sm:$0xff]  }
  0x35   : > { %1285 = vmatpush1.bf16.msra.mxu0 %v1809_v47  ;;  %1200 = vmatprep.subr.bf16.mxu1 %v1810_v49  ;;  %v1905_v47 = vld [vmem:[%s2499_s1 + $0x3a4] ss:$8 sps:$4 sm:$0xff]   ;;  %v1903_v49 = vld [vmem:[%s2499_s1 + $0x3a0] ss:$8 sps:$4 sm:$0xff]  }
  0x36   : > { %1286 = vmatprep.subr.bf16.mxu0 %v1812_v50  ;;  %v1908_v50 = vld [vmem:[%s2499_s1 + $0x1b4] ss:$8 sps:$4 sm:$0xff]  }
  0x38   : > { %1201 = vmatpush1.bf16.msra.mxu1 %v1814_v52  ;;  %v1906_v52 = vld [vmem:[%s2499_s1 + $0x1b0] ss:$8 sps:$4 sm:$0xff]  }
  0x39   : > { %1287 = vmatpush1.bf16.msra.mxu0 %v1815_v53  ;;  %1202 = vmatprep.subr.bf16.mxu1 %v1816_v54  ;;  %v1909_v53 = vld [vmem:[%s2499_s1 + $0x3b0] ss:$8 sps:$4 sm:$0xff]   ;;  %v1914_v54 = vld [vmem:[%s2499_s1 + $0x1c4] ss:$8 sps:$4 sm:$0xff]  }
  0x3a   : > { %1288 = vmatprep.subr.bf16.mxu0 %v1818_v55  ;;  %v1917_v55 = vld [vmem:[%s2499_s1 + $0x3c4] ss:$8 sps:$4 sm:$0xff]  }
  0x3c   : > { %1203 = vmatpush1.bf16.msra.mxu1 %v1820_v56  ;;  %v1912_v56 = vld [vmem:[%s2499_s1 + $0x1c0] ss:$8 sps:$4 sm:$0xff]  }
  0x3d   : > { %1289 = vmatpush1.bf16.msra.mxu0 %v1821_v57  ;;  %1204 = vmatprep.subr.bf16.mxu1 %v1822_v58  ;;  %v1915_v57 = vld [vmem:[%s2499_s1 + $0x3c0] ss:$8 sps:$4 sm:$0xff]   ;;  %v1920_v58 = vld [vmem:[%s2499_s1 + $0x1d4] ss:$8 sps:$4 sm:$0xff]  }
  0x3e   : > { %1290 = vmatprep.subr.bf16.mxu0 %v1824_v59  ;;  %v1923_v59 = vld [vmem:[%s2499_s1 + $0x3d4] ss:$8 sps:$4 sm:$0xff]  }
  0x40   : > { %1205 = vmatpush1.bf16.msra.mxu1 %v1826_v60  ;;  %v1918_v60 = vld [vmem:[%s2499_s1 + $0x1d0] ss:$8 sps:$4 sm:$0xff]  }
  0x41   : > { %1291 = vmatpush1.bf16.msra.mxu0 %v1827_v61  ;;  %1206 = vmatprep.subr.bf16.mxu1 %v1828_v62  ;;  %v1921_v61 = vld [vmem:[%s2499_s1 + $0x3d0] ss:$8 sps:$4 sm:$0xff]   ;;  %v1926_v62 = vld [vmem:[%s2499_s1 + $0x1e4] ss:$8 sps:$4 sm:$0xff]  }
  0x42   : > { %1292 = vmatprep.subr.bf16.mxu0 %v1830_v63  ;;  %v1929_v63 = vld [vmem:[%s2499_s1 + $0x3e4] ss:$8 sps:$4 sm:$0xff]  }
  0x44   : > { %1207 = vmatpush1.bf16.msra.mxu1 %v1832_v0  ;;  %v1924_v0 = vld [vmem:[%s2499_s1 + $0x1e0] ss:$8 sps:$4 sm:$0xff]  }
  0x45   : > { %1293 = vmatpush1.bf16.msra.mxu0 %v1833_v1  ;;  %1219 = vmatprep.subr.bf16.mxu1 %v1839_v2  ;;  %v1927_v1 = vld [vmem:[%s2499_s1 + $0x3e0] ss:$8 sps:$4 sm:$0xff]   ;;  %v1932_v2 = vld [vmem:[%s2499_s1 + $0x1f4] ss:$8 sps:$4 sm:$0xff]  }
  0x46   : > { %1305 = vmatprep.subr.bf16.mxu0 %v1845_v3  ;;  %v1935_v3 = vld [vmem:[%s2499_s1 + $0x3f4] ss:$8 sps:$4 sm:$0xff]  }
  0x47   : > { %1209 = vmatmul.mubr.bf16.vlgmr.msra.gmra.mrb[0].mxu1 %v1834_v4  ;;  %v1930_v4 = vld [vmem:[%s2499_s1 + $0x1f0] ss:$8 sps:$4 sm:$0xff]  }
  0x48   : > { %1295 = vmatmul.mubr.bf16.vlgmr.msra.gmra.mrb[0].mxu0 %v1840_v6  ;;  %1220 = vmatpush1.bf16.msra.mxu1 %v1837_v5  ;;  %v1933_v5 = vld [vmem:[%s2499_s1 + $0x3f0] ss:$8 sps:$4 sm:$0xff]   ;;  %v1944_v6 = vld [vmem:[%s2499_s1 + $0x404] ss:$8 sps:$4 sm:$0xff]  }
  0x49   : > { %1306 = vmatpush1.bf16.msra.mxu0 %v1843_v7  ;;  %1221 = vmatprep.subr.bf16.mxu1 %v1848_v8  ;;  %v1936_v7 = vld [vmem:[%s2174_s17 + $0x8] ss:$36 sps:$4 sm:$0xff]   ;;  %v1939_v8 = vld [vmem:[%s2174_s17 + $0x18] ss:$36 sps:$4 sm:$0xff]  }
  0x4a   : > { %1307 = vmatprep.subr.bf16.mxu0 %v1851_v9  ;;  %1251 = vmatprep.mubr.bf16.mxu1 %v1938_v34  ;;  %v1942_v9 = vld [vmem:[%s2499_s1 + $0x400] ss:$8 sps:$4 sm:$0xff]  }
  0x4b   : > { %1337 = vmatprep.mubr.bf16.mxu0 %v1941_v35 }
  0x4c   : > { %1222 = vmatpush1.bf16.msra.mxu1 %v1846_v10  ;;  %v1947_v10 = vld [vmem:[%s2499_s1 + $0x414] ss:$8 sps:$4 sm:$0xff]  }
  0x4d   : > { %1308 = vmatpush1.bf16.msra.mxu0 %v1849_v11  ;;  %1223 = vmatprep.subr.bf16.mxu1 %v1854_v12  ;;  %v1945_v11 = vld [vmem:[%s2499_s1 + $0x410] ss:$8 sps:$4 sm:$0xff]   ;;  %v1991_v12 = vmov 0  }
  0x4e   : > { %1309 = vmatprep.subr.bf16.mxu0 %v1857_v13  ;;  %v1950_v13 = vld [vmem:[%s2499_s1 + $0x424] ss:$8 sps:$4 sm:$0xff]  }
  0x50   : > { %1224 = vmatpush1.bf16.msra.mxu1 %v1852_v14  ;;  %v1948_v14 = vld [vmem:[%s2499_s1 + $0x420] ss:$8 sps:$4 sm:$0xff]  }
  0x51   : > { %1310 = vmatpush1.bf16.msra.mxu0 %v1855_v15  ;;  %1225 = vmatprep.subr.bf16.mxu1 %v1860_v16  ;;  %v1953_v15 = vld [vmem:[%s2499_s1 + $0x434] ss:$8 sps:$4 sm:$0xff]   ;;  %v1951_v16 = vld [vmem:[%s2499_s1 + $0x430] ss:$8 sps:$4 sm:$0xff]  }
  0x52   : > { %1311 = vmatprep.subr.bf16.mxu0 %v1863_v17  ;;  %v1956_v17 = vld [vmem:[%s2499_s1 + $0x444] ss:$8 sps:$4 sm:$0xff]  }
  0x54   : > { %1226 = vmatpush1.bf16.msra.mxu1 %v1858_v18  ;;  %v1954_v18 = vld [vmem:[%s2499_s1 + $0x440] ss:$8 sps:$4 sm:$0xff]  }
  0x55   : > { %1312 = vmatpush1.bf16.msra.mxu0 %v1861_v19  ;;  %1227 = vmatprep.subr.bf16.mxu1 %v1866_v20  ;;  %v1959_v19 = vld [vmem:[%s2499_s1 + $0x454] ss:$8 sps:$4 sm:$0xff]   ;;  %v1957_v20 = vld [vmem:[%s2499_s1 + $0x450] ss:$8 sps:$4 sm:$0xff]  }
  0x56   : > { %1313 = vmatprep.subr.bf16.mxu0 %v1869_v21  ;;  %v1962_v21 = vld [vmem:[%s2499_s1 + $0x464] ss:$8 sps:$4 sm:$0xff]  }
  0x58   : > { %1228 = vmatpush1.bf16.msra.mxu1 %v1864_v22  ;;  %v1960_v22 = vld [vmem:[%s2499_s1 + $0x460] ss:$8 sps:$4 sm:$0xff]  }
  0x59   : > { %1314 = vmatpush1.bf16.msra.mxu0 %v1867_v23  ;;  %1229 = vmatprep.subr.bf16.mxu1 %v1872_v24  ;;  %v1965_v23 = vld [vmem:[%s2499_s1 + $0x474] ss:$8 sps:$4 sm:$0xff]   ;;  %v1963_v24 = vld [vmem:[%s2499_s1 + $0x470] ss:$8 sps:$4 sm:$0xff]  }
  0x5a   : > { %1315 = vmatprep.subr.bf16.mxu0 %v1875_v25  ;;  %v1966_v25 = vld [vmem:[%s2174_s17 + $0x20] ss:$36 sps:$4 sm:$0xff]   ;;  %s1689_s17 = sshll.u32 %s2507_s30, 3 }
  0x5b   : > { %s240_s22 = scalar_lea.vmem %s2501_s3, %s1689_s17 }
  0x5c   : > { %1230 = vmatpush1.bf16.msra.mxu1 %v1870_v26 }
  0x5d   : > { %1316 = vmatpush1.bf16.msra.mxu0 %v1873_v27  ;;  %1231 = vmatprep.subr.bf16.mxu1 %v1878_v28 }
  0x5e   : > { %1317 = vmatprep.subr.bf16.mxu0 %v1881_v29 }
  0x60   : > { %1232 = vmatpush1.bf16.msra.mxu1 %v1876_v30  ;;  %v400_v30 = vlaneseq }
  0x61   : > { %1318 = vmatpush1.bf16.msra.mxu0 %v1879_v31  ;;  %1233 = vmatprep.subr.bf16.mxu1 %v1884_v32 }
  0x62   : > { %1319 = vmatprep.subr.bf16.mxu0 %v1887_v33  ;;  %v401_v31 = vshrl.u32 %v400_v30, 7  ;;  %v398_v33 = vld [vmem:[%s2500_s2] sm:$0x3] }
  0x64   : > { %1234 = vmatpush1.bf16.msra.mxu1 %v1882_v36  ;;  %v402_v32 = vsub.s32 0, %v401_v31  ;;  %v406_v34 = vsub.s32 1, %v401_v31 }
  0x65   : > { %1320 = vmatpush1.bf16.msra.mxu0 %v1885_v37  ;;  %1235 = vmatprep.subr.bf16.mxu1 %v1890_v38 }
  0x66   : > { %1321 = vmatprep.subr.bf16.mxu0 %v1893_v39  ;;  %v403_v35 = vrot.slane %v398_v33, %v402_v32  ;;  %v407_v36 = vrot.slane %v398_v33, %v406_v34 }
  0x68   : > { %1236 = vmatpush1.bf16.msra.mxu1 %v1888_v40 }
  0x69   : > { %1322 = vmatpush1.bf16.msra.mxu0 %v1891_v41  ;;  %1237 = vmatprep.subr.bf16.mxu1 %v1896_v42 }
  0x6a   : > { %1323 = vmatprep.subr.bf16.mxu0 %v1899_v43 }
  0x6c   : > { %1238 = vmatpush1.bf16.msra.mxu1 %v1894_v44 }
  0x6d   : > { %1324 = vmatpush1.bf16.msra.mxu0 %v1897_v45  ;;  %1239 = vmatprep.subr.bf16.mxu1 %v1902_v46 }
  0x6e   : > { %1325 = vmatprep.subr.bf16.mxu0 %v1905_v47 }
  0x70   : > { %1240 = vmatpush1.bf16.msra.mxu1 %v1900_v48 }
  0x71   : > { %1326 = vmatpush1.bf16.msra.mxu0 %v1903_v49  ;;  %1241 = vmatprep.subr.bf16.mxu1 %v1908_v50 }
  0x72   : > { %1327 = vmatprep.subr.bf16.mxu0 %v1911_v51 }
  0x74   : > { %1242 = vmatpush1.bf16.msra.mxu1 %v1906_v52 }
  0x75   : > { %1328 = vmatpush1.bf16.msra.mxu0 %v1909_v53  ;;  %1243 = vmatprep.subr.bf16.mxu1 %v1914_v54 }
  0x76   : > { %1329 = vmatprep.subr.bf16.mxu0 %v1917_v55 }
  0x78   : > { %1244 = vmatpush1.bf16.msra.mxu1 %v1912_v56 }
  0x79   : > { %1330 = vmatpush1.bf16.msra.mxu0 %v1915_v57  ;;  %1245 = vmatprep.subr.bf16.mxu1 %v1920_v58 }
  0x7a   : > { %1331 = vmatprep.subr.bf16.mxu0 %v1923_v59 }
  0x7c   : > { %1246 = vmatpush1.bf16.msra.mxu1 %v1918_v60 }
  0x7d   : > { %1332 = vmatpush1.bf16.msra.mxu0 %v1921_v61  ;;  %1247 = vmatprep.subr.bf16.mxu1 %v1926_v62 }
  0x7e   : > { %1333 = vmatprep.subr.bf16.mxu0 %v1929_v63 }
  0x80   : > { %1248 = vmatpush1.bf16.msra.mxu1 %v1924_v0 }
  0x81   : > { %1334 = vmatpush1.bf16.msra.mxu0 %v1927_v1  ;;  %1249 = vmatprep.subr.bf16.mxu1 %v1932_v2 }
  0x82   : > { %1335 = vmatprep.subr.bf16.mxu0 %v1935_v3 }
  0x84   : > { %1250 = vmatpush1.bf16.msra.mxu1 %v1930_v4 }
  0x85   : > { %1336 = vmatpush1.bf16.msra.mxu0 %v1933_v5 }
  0x86   : > { %1348 = vmatprep.subr.bf16.mxu0 %v1944_v6 }
  0x87   : > { %1252 = vmatmul.mubr.bf16.vlgmr.msra.gmra.mrb[0].mxu1 %v1936_v7 }
  0x88   : > { %1338 = vmatmul.mubr.bf16.vlgmr.msra.gmra.mrb[0].mxu0 %v1939_v8 }
  0x89   : > { %1349 = vmatpush1.bf16.msra.mxu0 %v1942_v9  ;;  %1380 = vmatprep.mubr.bf16.mxu0 %v1991_v12 }
  0x8a   : > { %1350 = vmatprep.subr.bf16.mxu0 %v1947_v10 }
  0x8d   : > { %1351 = vmatpush1.bf16.msra.mxu0 %v1945_v11 }
  0x8e   : > { %1352 = vmatprep.subr.bf16.mxu0 %v1950_v13 }
  0x91   : > { %1353 = vmatpush1.bf16.msra.mxu0 %v1948_v14 }
  0x92   : > { %1354 = vmatprep.subr.bf16.mxu0 %v1953_v15 }
  0x95   : > { %1355 = vmatpush1.bf16.msra.mxu0 %v1951_v16 }
  0x96   : > { %1356 = vmatprep.subr.bf16.mxu0 %v1956_v17 }
  0x99   : > { %1357 = vmatpush1.bf16.msra.mxu0 %v1954_v18 }
  0x9a   : > { %1358 = vmatprep.subr.bf16.mxu0 %v1959_v19 }
  0x9d   : > { %1359 = vmatpush1.bf16.msra.mxu0 %v1957_v20 }
  0x9e   : > { %1360 = vmatprep.subr.bf16.mxu0 %v1962_v21 }
  0xa1   : > { %1361 = vmatpush1.bf16.msra.mxu0 %v1960_v22 }
  0xa2   : > { %1362 = vmatprep.subr.bf16.mxu0 %v1965_v23 }
  0xa5   : > { %1363 = vmatpush1.bf16.msra.mxu0 %v1963_v24 }
  0xa8   : > { %1381 = vmatmul.mubr.bf16.vlgmr.msra.gmra.mrb[0].mxu0 %v1966_v25 }
 0x15a   : > { %v1253_v26 = vpop.f32.mrb[0].mxu1 }
 0x15b   : > { %v1255_v27 = vpop.f32.mrb[1].mxu1  ;;  %v1692_v37 = vadd.f32 %v1253_v26, %v403_v35 }
 0x15c   : > { %v1257_v28 = vpop.f32.mrb[2].mxu1  ;;  %v1694_v38 = vadd.f32 %v1255_v27, %v407_v36 }
 0x15d   : > { %v1259_v29 = vpop.f32.mrb[3].mxu1  ;;  %v1696_v40 = vadd.f32 %v1257_v28, %v403_v35 }
 0x15e   : > { %v1698_v43 = vadd.f32 %v1259_v29, %v407_v36 }
 0x17b   : > { %v1382_v39 = vpop.f32.mrb[0].mxu0 }
 0x17c   : > { %v1693_v41 = vadd.f32 %v1692_v37, %v1382_v39  ;;  %v1384_v42 = vpop.f32.mrb[1].mxu0 }
 0x17d   : > { %v1695_v44 = vadd.f32 %v1694_v38, %v1384_v42  ;;  %v1386_v45 = vpop.f32.mrb[2].mxu0 }
 0x17e   : > { %v1391_v46 = vmax.f32 %v1693_v41, 0.0  ;;  %v1697_v47 = vadd.f32 %v1696_v40, %v1386_v45  ;;  %v1388_v48 = vpop.f32.mrb[3].mxu0 }
 0x17f   : > { %v1392_v49 = vmax.f32 %v1695_v44, 0.0  ;;  %v1699_v50 = vadd.f32 %v1698_v43, %v1388_v48 }
 0x180   : > { %v1393_v51 = vmax.f32 %v1697_v47, 0.0 }
 0x181   : > { %v1690_v52 = vpack.c.bf16 %v1392_v49, %v1391_v46  ;;  %v1394_v53 = vmax.f32 %v1699_v50, 0.0 }
 0x183   : > { %1407 = vst [vmem:[%s240_s22] sm:$0xff] %v1690_v52  ;;  %v1691_v54 = vpack.c.bf16 %v1394_v53, %v1393_v51 }
 0x185   : > { %1408 = vst [vmem:[%s240_s22 + $0x8] sm:$0xff] %v1691_v54 }
 0x186 PF: > { %s13_s14 = sadd.s32 1, %s1989_s14   ;;  %s2502_s12 = smov %s1985_s13 }
 0x187   : > { %p10_p5 = scmp.ge.s32.totalorder %s13_s14, 4   ;;  %s2503_s13 = smov %s2505_s15 }
 0x189   :  { %12 = sbr.rel (!%p10_p5) target bundleno = 2 (0x2), region = 68 }

// kernel: rqvae_forward.11
= control target key start
LH: loop header
LB: loop body
LE: loop exit
PB: predicated region body
PF: predicated region fallthrough
CT: control target
= control target key end

     0   :  { %s1286_s12 = smov 0   ;;  %s1288_s13 = smov 0   ;;  %s1470_s0 = inlined_call_operand.vmem [shape: bf16[128,576], index: 0, kind: input, shape index: {}]   ;;  %s1471_s1 = inlined_call_operand.vmem [shape: bf16[576,12], index: 1, kind: input, shape index: {}]   ;;  %s1472_s2 = inlined_call_operand.vmem [shape: f32[1,12], index: 2, kind: input, shape index: {}]   ;;  %s1473_s3 = inlined_call_operand.vmem [shape: f32[128,12], index: 3, kind: output, shape index: {}]  }
   0x1   :  { %s1290_s14 = smov 0  }
   0x2 LB: > { %s25_s15 = sadd.s32 1, %s1260_s13  ;;  %p973_p0 = scmp.ge.s32.totalorder %s1264_s14, 1  ;;  %s1264_s14 = sphi %s1290_s14, %s13_s14   ;;  %s1260_s13 = sphi %s1288_s13, %s1475_s13   ;;  %s1256_s12 = sphi %s1286_s12, %s1474_s12  }
   0x3   : > { %p27_p1 = scmp.ge.s32.totalorder %s25_s15, 2  ;;  %p170_p2 = scmp.lt.s32.totalorder %s1264_s14, 3 }
   0x5   : > { %s1477_s15 = smov (%p27_p1, %s25_s15), 0  ;;  %p171_p3 = pnand %p973_p0, %p170_p2 }
   0x6   : > { %v1178_v0 = vld [vmem:[%s1471_s1 + $0x40] sm:$0xff] (!%p171_p3)   ;;  %v1182_v4 = vld [vmem:[%s1471_s1 + $0x48] sm:$0xff] (!%p171_p3)   ;;  %v1186_v8 = vld [vmem:[%s1471_s1 + $0x50] sm:$0xff] (!%p171_p3)   ;;  %s974_s23 = sshll.u32 (!%p171_p3), %s1256_s12, 3  ;;  %vm648_vm0 = vcmask (!%p171_p3), 523264   ;;  %vm856_vm1 = vcmask (!%p171_p3), 97280  }
   0x7   : > { %174 = sbr.rel (%p171_p3) target bundleno = 291 (0x123), region = 32  ;;  %v1179_v1 = vld [vmem:[%s1471_s1 + $0xc0] sm:$0xff] (!%p171_p3)   ;;  %1041 = vmatprep.subr.bf16.mxu0 (!%p171_p3), %v1178_v0  ;;  %v1183_v5 = vld [vmem:[%s1471_s1 + $0xc8] sm:$0xff] (!%p171_p3)   ;;  %v1187_v9 = vld [vmem:[%s1471_s1 + $0xd0] sm:$0xff] (!%p171_p3)   ;;  %p206_p4 = scmp.lt.s32.totalorder (!%p171_p3), %s974_s23, 15 }
   0x8   : > { %v1180_v2 = vld [vmem:[%s1471_s1] sm:$0xff] (!%p171_p3)   ;;  %1081 = vmatprep.subr.bf16.mxu1 (!%p171_p3), %v1179_v1  ;;  %v1184_v6 = vld [vmem:[%s1471_s1 + $0x8] sm:$0xff] (!%p171_p3)   ;;  %v1188_v10 = vld [vmem:[%s1471_s1 + $0x10] sm:$0xff] (!%p171_p3)  }
   0x9   : > { %v1181_v3 = vld [vmem:[%s1471_s1 + $0x80] sm:$0xff] (!%p171_p3)   ;;  %1042 = vmatpush3.bf16.msra.mxu0 (!%p171_p3), %v1180_v2  ;;  %v1185_v7 = vld [vmem:[%s1471_s1 + $0x88] sm:$0xff] (!%p171_p3)   ;;  %v1189_v11 = vld [vmem:[%s1471_s1 + $0x90] sm:$0xff] (!%p171_p3)  }
   0xa   : > { %1082 = vmatpush3.bf16.msra.mxu1 (!%p171_p3), %v1181_v3  ;;  %1043 = vmatprep.subr.bf16.mxu0 (!%p171_p3), %v1182_v4  ;;  %v1190_v12 = vld [vmem:[%s1471_s1 + $0x58] sm:$0xff] (!%p171_p3)   ;;  %v1194_v16 = vld [vmem:[%s1471_s1 + $0x60] sm:$0xff] (!%p171_p3)   ;;  %v1198_v20 = vld [vmem:[%s1471_s1 + $0x68] sm:$0xff] (!%p171_p3)  }
   0xb   : > { %1083 = vmatprep.subr.bf16.mxu1 (!%p171_p3), %v1183_v5  ;;  %v1191_v13 = vld [vmem:[%s1471_s1 + $0xd8] sm:$0xff] (!%p171_p3)   ;;  %v1195_v17 = vld [vmem:[%s1471_s1 + $0xe0] sm:$0xff] (!%p171_p3)   ;;  %v1199_v21 = vld [vmem:[%s1471_s1 + $0xe8] sm:$0xff] (!%p171_p3)  }
   0xc   : > { %v1192_v14 = vld [vmem:[%s1471_s1 + $0x18] sm:$0xff] (!%p171_p3)   ;;  %v1196_v18 = vld [vmem:[%s1471_s1 + $0x20] sm:$0xff] (!%p171_p3)   ;;  %v1200_v22 = vld [vmem:[%s1471_s1 + $0x28] sm:$0xff] (!%p171_p3)  }
   0xd   : > { %1044 = vmatpush3.bf16.msra.mxu0 (!%p171_p3), %v1184_v6  ;;  %v1193_v15 = vld [vmem:[%s1471_s1 + $0x98] sm:$0xff] (!%p171_p3)   ;;  %v1197_v19 = vld [vmem:[%s1471_s1 + $0xa0] sm:$0xff] (!%p171_p3)   ;;  %v1201_v23 = vld [vmem:[%s1471_s1 + $0xa8] sm:$0xff] (!%p171_p3)  }
   0xe   : > { %1084 = vmatpush3.bf16.msra.mxu1 %v1185_v7  ;;  %1045 = vmatprep.subr.bf16.mxu0 %v1186_v8  ;;  %s1479_s23 = smov (!%p206_p4, %s974_s23), 15  ;;  %v1202_v24 = vld [vmem:[%s1471_s1 + $0x70] sm:$0xff]   ;;  %v1206_v28 = vld [vmem:[%s1471_s1 + $0x78] sm:$0xff]   ;;  %v1216_v36 = vld [vmem:[%s1471_s1 + $0x100] sm:$0xff]  }
   0xf   : > { %1085 = vmatprep.subr.bf16.mxu1 %v1187_v9  ;;  %v1203_v25 = vld [vmem:[%s1471_s1 + $0xf0] sm:$0xff]   ;;  %s1153_s22 = smul.u32 20, %s1479_s23  ;;  %v1207_v29 = vld [vmem:[%s1471_s1 + $0xf8] sm:$0xff]   ;;  %v1223_v39 = vld [vmem:[%s1471_s1 + $0x108] sm:$0xff]   ;;  %s977_s26 = sshll.u32 %s1479_s23, 3 }
  0x10   : > { %v1204_v26 = vld [vmem:[%s1471_s1 + $0x30] sm:$0xff]   ;;  %v1208_v30 = vld [vmem:[%s1471_s1 + $0x38] sm:$0xff]   ;;  %v978_v58 = vld [vmem:[%s1472_s2] ss:$0 sm:$0xff]  ;;  %s226_s29 = scalar_lea.vmem %s1473_s3, %s977_s26 }
  0x11   : > { %1046 = vmatpush3.bf16.msra.mxu0 %v1188_v10  ;;  %v1205_v27 = vld [vmem:[%s1471_s1 + $0xb0] sm:$0xff]   ;;  %s1403_s6 = scalar_lea.vmem %s1470_s0, %s1153_s22  ;;  %v1209_v31 = vld [vmem:[%s1471_s1 + $0xb8] sm:$0xff]  }
  0x12   : > { %1086 = vmatpush3.bf16.msra.mxu1 %v1189_v11  ;;  %1047 = vmatprep.subr.bf16.mxu0 %v1190_v12  ;;  %v1210_v32 = vld [vmem:[%s1403_s6] ss:$20 sps:$4 sm:$0xff]   ;;  %v1212_v33 = vld [vmem:[%s1403_s6 + $0x4] ss:$20 sps:$4 sm:$0xff]   ;;  %v1213_v34 = vld [vmem:[%s1403_s6 + $0x8] ss:$20 sps:$4 sm:$0xff]  }
  0x13   : > { %1087 = vmatprep.subr.bf16.mxu1 %v1191_v13  ;;  %v1215_v35 = vld [vmem:[%s1403_s6 + $0xc] ss:$20 sps:$4 sm:$0xff]   ;;  %693 = vmatprep.mubr.bf16.mxu0 %v1212_v33  ;;  %v1219_v38 = vld [vmem:[%s1403_s6 + $0x34] ss:$20 sps:$4 sm:$0xff]   ;;  %v1222_v41 = vld [vmem:[%s1403_s6 + $0x30] ss:$20 sps:$4 sm:$0xff]  }
  0x14   : > { %758 = vmatprep.mubr.bf16.mxu1 %v1215_v35  ;;  %v1217_v37 = vld [vmem:[%s1403_s6 + $0x2c] ss:$20 sps:$4 sm:$0xff]   ;;  %v1221_v40 = vld [vmem:[%s1403_s6 + $0x28] ss:$20 sps:$4 sm:$0xff]   ;;  %v1230_v44 = vld [vmem:[%s1471_s1 + $0x110] sm:$0xff]  }
  0x15   : > { %1048 = vmatpush3.bf16.msra.mxu0 %v1192_v14  ;;  %v1224_v42 = vld [vmem:[%s1403_s6 + $0x54] ss:$20 sps:$4 sm:$0xff]   ;;  %v1226_v43 = vld [vmem:[%s1403_s6 + $0x5c] ss:$20 sps:$4 sm:$0xff]   ;;  %v1229_v47 = vld [vmem:[%s1403_s6 + $0x58] ss:$20 sps:$4 sm:$0xff]  }
  0x16   : > { %1088 = vmatpush3.bf16.msra.mxu1 %v1193_v15  ;;  %1049 = vmatprep.subr.bf16.mxu0 %v1194_v16  ;;  %v1237_v45 = vld [vmem:[%s1471_s1 + $0x118] sm:$0xff]   ;;  %v1228_v46 = vld [vmem:[%s1403_s6 + $0x50] ss:$20 sps:$4 sm:$0xff]   ;;  %v1236_v51 = vld [vmem:[%s1403_s6 + $0x80] ss:$20 sps:$4 sm:$0xff]  }
  0x17   : > { %1089 = vmatprep.subr.bf16.mxu1 %v1195_v17  ;;  %v1231_v48 = vld [vmem:[%s1403_s6 + $0x7c] ss:$20 sps:$4 sm:$0xff]   ;;  %v1233_v49 = vld [vmem:[%s1403_s6 + $0x84] ss:$20 sps:$4 sm:$0xff]   ;;  %v1239_v53 = vld [vmem:[%s1403_s6 + $0x60] ss:$20 sps:$4 sm:$0xff]  }
  0x18   : > { %v1235_v50 = vld [vmem:[%s1403_s6 + $0x78] ss:$20 sps:$4 sm:$0xff]   ;;  %v1238_v52 = vld [vmem:[%s1403_s6 + $0x10] ss:$20 sps:$4 sm:$0xff]   ;;  %v1241_v55 = vld [vmem:[%s1403_s6 + $0x88] ss:$20 sps:$4 sm:$0xff]  }
  0x19   : > { %1050 = vmatpush3.bf16.msra.mxu0 %v1196_v18  ;;  %v1240_v54 = vld [vmem:[%s1403_s6 + $0x38] ss:$20 sps:$4 sm:$0xff]  }
  0x1a   : > { %1090 = vmatpush3.bf16.msra.mxu1 %v1197_v19  ;;  %1051 = vmatprep.subr.bf16.mxu0 %v1198_v20 }
  0x1b   : > { %1091 = vmatprep.subr.bf16.mxu1 %v1199_v21 }
  0x1d   : > { %1052 = vmatpush3.bf16.msra.mxu0 %v1200_v22 }
  0x1e   : > { %1092 = vmatpush3.bf16.msra.mxu1 %v1201_v23  ;;  %1053 = vmatprep.subr.bf16.mxu0 %v1202_v24 }
  0x1f   : > { %1093 = vmatprep.subr.bf16.mxu1 %v1203_v25 }
  0x21   : > { %1054 = vmatpush3.bf16.msra.mxu0 %v1204_v26 }
  0x22   : > { %1094 = vmatpush3.bf16.msra.mxu1 %v1205_v27  ;;  %1055 = vmatprep.subr.bf16.mxu0 %v1206_v28 }
  0x23   : > { %1095 = vmatprep.subr.bf16.mxu1 %v1207_v29 }
  0x25   : > { %1056 = vmatpush3.bf16.msra.mxu0 %v1208_v30 }
  0x26   : > { %1096 = vmatpush3.bf16.msra.mxu1 %v1209_v31  ;;  %1129 = vmatprep.subr.bf16.mxu0 %v1216_v36 }
  0x27   : > { %1145 = vmatprep.subr.bf16.mxu1 %v1216_v36 }
  0x28   : > { %694 = vmatmul.mubr.bf16.vlgmr.msra.gmra.mrb[0].mxu0 %v1210_v32 }
  0x29   : > { %759 = vmatmul.mubr.bf16.vlgmr.msra.gmra.mrb[0].mxu1 %v1213_v34  ;;  %1130 = vmatpush3.bf16.msra.mxu0 %v1216_v36 }
  0x2a   : > { %1149 = vmatpush3.bf16.msra.mxu1 %v1216_v36  ;;  %701 = vmatprep.mubr.bf16.mxu0 %v1217_v37 }
  0x2b   : > { %766 = vmatprep.mubr.bf16.mxu1 %v1219_v38  ;;  %1131 = vmatprep.subr.bf16.mxu0 %v1223_v39 }
  0x2c   : > { %1146 = vmatprep.subr.bf16.mxu1 %v1223_v39 }
  0x2d   : > { %1132 = vmatpush3.bf16.msra.mxu0 %v1223_v39 }
  0x2e   : > { %1150 = vmatpush3.bf16.msra.mxu1 %v1223_v39  ;;  %1133 = vmatprep.subr.bf16.mxu0 %v1230_v44 }
  0x2f   : > { %1147 = vmatprep.subr.bf16.mxu1 %v1230_v44 }
  0x30   : > { %702 = vmatmul.mubr.bf16.gmra.mrb[4].mxu0 %v1221_v40 }
  0x31   : > { %767 = vmatmul.mubr.bf16.gmra.mrb[4].mxu1 %v1222_v41  ;;  %709 = vmatprep.mubr.bf16.mxu0 %v1224_v42 }
  0x32   : > { %774 = vmatprep.mubr.bf16.mxu1 %v1226_v43  ;;  %1134 = vmatpush3.bf16.msra.mxu0 %v1230_v44 }
  0x33   : > { %1151 = vmatpush3.bf16.msra.mxu1 %v1230_v44  ;;  %1135 = vmatprep.subr.bf16.mxu0 %v1237_v45 }
  0x34   : > { %1148 = vmatprep.subr.bf16.mxu1 %v1237_v45 }
  0x36   : > { %1136 = vmatpush3.bf16.msra.mxu0 %v1237_v45 }
  0x37   : > { %1152 = vmatpush3.bf16.msra.mxu1 %v1237_v45 }
  0x38   : > { %710 = vmatmul.mubr.bf16.gmra.mrb[8].mxu0 %v1228_v46 }
  0x39   : > { %775 = vmatmul.mubr.bf16.gmra.mrb[8].mxu1 %v1229_v47  ;;  %717 = vmatprep.mubr.bf16.mxu0 %v1231_v48 }
  0x3a   : > { %782 = vmatprep.mubr.bf16.mxu1 %v1233_v49 }
  0x40   : > { %718 = vmatmul.mubr.bf16.gmra.mrb[12].mxu0 %v1235_v50 }
  0x41   : > { %783 = vmatmul.mubr.bf16.gmra.mrb[12].mxu1 %v1236_v51  ;;  %1137 = vmatprep.mubr.msk.bf16.mxu0 %vm648_vm0, %v1238_v52 }
  0x42   : > { %1141 = vmatprep.mubr.msk.bf16.mxu1 %vm648_vm0, %v1239_v53 }
  0x48   : > { %1138 = vmatmul.mubr.msk.bf16.vlgmr.msra.gmra.mrb[16].mxu0 %vm648_vm0, %v1240_v54 }
  0x49   : > { %1142 = vmatmul.mubr.msk.bf16.vlgmr.msra.gmra.mrb[16].mxu1 %vm648_vm0, %v1241_v55 }
  0xfb   : > { %v1057_v56 = vpop.f32.mrb[0].mxu0 }
  0xfc   : > { %v1097_v57 = vpop.f32.mrb[0].mxu1  ;;  %v1058_v59 = vpop.f32.mrb[1].mxu0 }
  0xfd   : > { %v1059_v60 = vadd.f32 %v1058_v59, %v1057_v56  ;;  %v1098_v61 = vpop.f32.mrb[1].mxu1  ;;  %v1060_v62 = vpop.f32.mrb[2].mxu0 }
  0xfe   : > { %v1099_v63 = vadd.f32 %v1098_v61, %v1097_v57  ;;  %v1100_v0 = vpop.f32.mrb[2].mxu1  ;;  %v1061_v1 = vpop.f32.mrb[3].mxu0 }
  0xff   : > { %v696_v2 = vadd.f32 %v1059_v60, %v978_v58  ;;  %v1062_v3 = vadd.f32 %v1061_v1, %v1060_v62  ;;  %v1101_v4 = vpop.f32.mrb[3].mxu1 }
 0x100   : > { %v1102_v5 = vadd.f32 %v1101_v4, %v1100_v0 }
 0x101   : > { %v699_v6 = vadd.f32 %v1062_v3, %v978_v58  ;;  %v761_v7 = vadd.f32 %v1099_v63, %v696_v2 }
 0x103   : > { %v1063_v8 = vpop.f32.mrb[4].mxu0  ;;  %v1446_v9 = vadd.f32 %v1102_v5, %v699_v6 }
 0x104   : > { %v1103_v10 = vpop.f32.mrb[4].mxu1  ;;  %v1064_v11 = vpop.f32.mrb[5].mxu0 }
 0x105   : > { %v1065_v12 = vadd.f32 %v1064_v11, %v1063_v8  ;;  %v1104_v13 = vpop.f32.mrb[5].mxu1  ;;  %v1066_v14 = vpop.f32.mrb[6].mxu0 }
 0x106   : > { %v1105_v15 = vadd.f32 %v1104_v13, %v1103_v10  ;;  %v1106_v16 = vpop.f32.mrb[6].mxu1  ;;  %v1067_v17 = vpop.f32.mrb[7].mxu0 }
 0x107   : > { %v704_v18 = vadd.f32 %v1065_v12, %v978_v58  ;;  %v1068_v19 = vadd.f32 %v1067_v17, %v1066_v14  ;;  %v1107_v20 = vpop.f32.mrb[7].mxu1 }
 0x108   : > { %v1108_v21 = vadd.f32 %v1107_v20, %v1106_v16 }
 0x109   : > { %v707_v22 = vadd.f32 %v1068_v19, %v978_v58  ;;  %v769_v23 = vadd.f32 %v1105_v15, %v704_v18 }
 0x10b   : > { %v1069_v24 = vpop.f32.mrb[8].mxu0  ;;  %v772_v25 = vadd.f32 %v1108_v21, %v707_v22 }
 0x10c   : > { %v1109_v26 = vpop.f32.mrb[8].mxu1  ;;  %v1070_v27 = vpop.f32.mrb[9].mxu0 }
 0x10d   : > { %v1071_v28 = vadd.f32 %v1070_v27, %v1069_v24  ;;  %v1110_v29 = vpop.f32.mrb[9].mxu1  ;;  %v1072_v30 = vpop.f32.mrb[10].mxu0 }
 0x10e   : > { %v1111_v31 = vadd.f32 %v1110_v29, %v1109_v26  ;;  %v1112_v32 = vpop.f32.mrb[10].mxu1  ;;  %v1073_v33 = vpop.f32.mrb[11].mxu0 }
 0x10f   : > { %v712_v34 = vadd.f32 %v1071_v28, %v978_v58  ;;  %v1074_v35 = vadd.f32 %v1073_v33, %v1072_v30  ;;  %v1113_v36 = vpop.f32.mrb[11].mxu1 }
 0x110   : > { %v1114_v37 = vadd.f32 %v1113_v36, %v1112_v32 }
 0x111   : > { %v715_v38 = vadd.f32 %v1074_v35, %v978_v58  ;;  %v777_v39 = vadd.f32 %v1111_v31, %v712_v34 }
 0x113   : > { %v1075_v40 = vpop.f32.mrb[12].mxu0  ;;  %v780_v41 = vadd.f32 %v1114_v37, %v715_v38 }
 0x114   : > { %v1115_v42 = vpop.f32.mrb[12].mxu1  ;;  %v1076_v43 = vpop.f32.mrb[13].mxu0 }
 0x115   : > { %v1077_v44 = vadd.f32 %v1076_v43, %v1075_v40  ;;  %v1116_v45 = vpop.f32.mrb[13].mxu1  ;;  %v1078_v46 = vpop.f32.mrb[14].mxu0 }
 0x116   : > { %v1117_v47 = vadd.f32 %v1116_v45, %v1115_v42  ;;  %v1118_v48 = vpop.f32.mrb[14].mxu1  ;;  %v1079_v49 = vpop.f32.mrb[15].mxu0 }
 0x117   : > { %v720_v50 = vadd.f32 %v1077_v44, %v978_v58  ;;  %v1080_v51 = vadd.f32 %v1079_v49, %v1078_v46  ;;  %v1119_v52 = vpop.f32.mrb[15].mxu1 }
 0x118   : > { %v1120_v53 = vadd.f32 %v1119_v52, %v1118_v48 }
 0x119   : > { %v723_v54 = vadd.f32 %v1080_v51, %v978_v58  ;;  %v785_v55 = vadd.f32 %v1117_v47, %v720_v50 }
 0x11b   : > { %v1139_v56 = vpop.f32.mrb[16].mxu0  ;;  %v788_v57 = vadd.f32 %v1120_v53, %v723_v54 }
 0x11c   : > { %v834_v59 = vadd.f32 %v1139_v56, %v769_v23  ;;  %v1143_v60 = vpop.f32.mrb[16].mxu1  ;;  %v825_v61 = vpop.f32.mrb[17].mxu0 }
 0x11d   : > { %v850_v62 = vadd.f32 %v1143_v60, %v785_v55  ;;  %v826_v63 = vadd.f32 %v825_v61, %v761_v7  ;;  %v841_v0 = vpop.f32.mrb[17].mxu1  ;;  %v1140_v1 = vpop.f32.mrb[18].mxu0 }
 0x11e   : > { %859 = vst.msk [vmem:[%s226_s29 + $0x10] sm:$0xff] %vm856_vm1, %v834_v59  ;;  %v842_v2 = vadd.f32 %v841_v0, %v777_v39  ;;  %v837_v3 = vadd.f32 %v1140_v1, %v772_v25  ;;  %v1144_v58 = vpop.f32.mrb[18].mxu1  ;;  %v828_v4 = vpop.f32.mrb[19].mxu0 }
 0x11f   : > { %863 = vst.msk [vmem:[%s226_s29 + $0x30] sm:$0xff] %vm856_vm1, %v850_v62  ;;  %857 = vst.msk [vmem:[%s226_s29] sm:$0xff] %vm856_vm1, %v826_v63  ;;  %v853_v5 = vadd.f32 %v1144_v58, %v788_v57  ;;  %v829_v6 = vadd.f32 %v828_v4, %v1446_v9  ;;  %v844_v8 = vpop.f32.mrb[19].mxu1 }
 0x120   : > { %861 = vst.msk [vmem:[%s226_s29 + $0x20] sm:$0xff] %vm856_vm1, %v842_v2  ;;  %860 = vst.msk [vmem:[%s226_s29 + $0x18] sm:$0xff] %vm856_vm1, %v837_v3  ;;  %v845_v7 = vadd.f32 %v844_v8, %v780_v41 }
 0x121   : > { %864 = vst.msk [vmem:[%s226_s29 + $0x38] sm:$0xff] %vm856_vm1, %v853_v5  ;;  %858 = vst.msk [vmem:[%s226_s29 + $0x8] sm:$0xff] %vm856_vm1, %v829_v6 }
 0x122   : > { %862 = vst.msk [vmem:[%s226_s29 + $0x28] sm:$0xff] %vm856_vm1, %v845_v7 }
 0x123 PF: > { %s13_s14 = sadd.s32 1, %s1264_s14   ;;  %s1474_s12 = smov %s1260_s13 }
 0x124   : > { %p10_p5 = scmp.ge.s32.totalorder %s13_s14, 4   ;;  %s1475_s13 = smov %s1477_s15 }
 0x126   :  { %12 = sbr.rel (!%p10_p5) target bundleno = 2 (0x2), region = 68 }

</bundles_post_ra>
